<compile_context>
chip_gen: v6e
topology: v6e:2x2x1
jax: 0.10.0
libtpu: 0.0.40
codegen_flags: <defaults>
</compile_context>

<pallas_src>
import functools
import math

import jax
import jax.numpy as jnp
from jax import lax
from jax.experimental import pallas as pl
from jax.experimental.pallas import tpu as pltpu

# hyptorch pmath numerical constants
MIN_NORM = 1e-15      # clamp on ||x||, ||Mx|| in mobius_matvec
ARTANH_EPS = 1e-5     # artanh input clamped to [-1+eps, 1-eps]
NORM_CLAMP = 1e-5     # norm clamp in expmap0 / project
PROJ_EPS = 1e-3       # project: maxnorm = (1 - 1e-3)/sqrt(c)
MOBADD_EPS = 1e-5     # mobius_add: denominator + 1e-5


def _hyp_eq_linear_kernel(x_ref, w_ref, bh_ref, y2_ref, o_ref, *, c, c_add):
    x = x_ref[...].astype(jnp.float32)            # (TB, IN)
    b_h = bh_ref[...].astype(jnp.float32)         # (1, OUTP), already expmap0'ed
    y2 = y2_ref[0, 0]                             # scalar ||b_h||^2 (SMEM)

    sqrt_c = jnp.float32(math.sqrt(c))
    inv_sqrt_c = jnp.float32(1.0 / math.sqrt(c))
    inv_c = jnp.float32(1.0 / c)
    ca = jnp.float32(c_add)
    maxnorm = jnp.float32((1.0 - PROJ_EPS) / math.sqrt(c))

    # ---- mobius_matvec(w_lr, x, c): canonical MXU matmul; w_mul already folded into w ----
    mx = jnp.dot(x, w_ref[...], preferred_element_type=jnp.float32)   # (TB, OUTP) f32

    x_sq = jnp.sum(x * x, axis=-1, keepdims=True)                     # (TB, 1)
    mx_sq = jnp.sum(mx * mx, axis=-1, keepdims=True)                  # (TB, 1)
    # norms via rsqrt (EUP slot) instead of sqrt + divide (VALU slot)
    inv_x_norm = lax.rsqrt(jnp.maximum(x_sq, MIN_NORM * MIN_NORM))    # (TB, 1)
    inv_mx_norm = lax.rsqrt(jnp.maximum(mx_sq, MIN_NORM * MIN_NORM))  # (TB, 1)
    x_norm = x_sq * inv_x_norm                                        # == ||x|| when unclamped
    mx_norm = mx_sq * inv_mx_norm

    # artanh(sqrt_c * ||x||): one log + one approx EUP reciprocal, all on (TB, 1)
    a = jnp.clip(sqrt_c * x_norm, -1.0 + ARTANH_EPS, 1.0 - ARTANH_EPS)
    artanh = 0.5 * jnp.log((1.0 + a) * pl.reciprocal(1.0 - a, approx=True))

    t = jnp.tanh(mx_norm * inv_x_norm * artanh)                       # (TB, 1)
    zero_row = mx_sq == 0.0                                           # (Mx == 0).prod(-1) proxy
    mv_scale = jnp.where(zero_row, 0.0, t * inv_mx_norm * inv_sqrt_c)  # mv = mx * mv_scale
    # ||mv||^2 via the identity tanh(...)^2 / c (exact when mx_norm is unclamped;
    # negligible difference otherwise), gated by the zero-row mask.
    x2 = jnp.where(zero_row, 0.0, (t * t) * inv_c)                    # (TB, 1)

    # ---- mobius_add(mv, b_h) with c_add = 1.0 (bug-compatible, see header) ----
    # <mv, b_h> = mv_scale * <mx, b_h>  -> single full-width multiply + reduce
    xy = mv_scale * jnp.sum(mx * b_h, axis=-1, keepdims=True)         # (TB, 1)
    A = 1.0 + 2.0 * ca * xy + ca * y2                                 # (TB, 1)
    Bc = 1.0 - ca * x2                                                # (TB, 1)
    denom = 1.0 + 2.0 * ca * xy + (ca * ca) * x2 * y2                 # (TB, 1)
    inv_denom = pl.reciprocal(denom + MOBADD_EPS, approx=True)        # (TB, 1), EUP

    # ---- project(., c): ||added||^2 computed algebraically (no full-width reduction) ----
    #   added = (A*mv + Bc*b_h) * inv_denom
    #   ||added||^2 = (A^2*x2 + 2*A*Bc*xy + Bc^2*y2) * inv_denom^2
    a_sq = (A * A * x2 + 2.0 * A * Bc * xy + Bc * Bc * y2) * (inv_denom * inv_denom)
    inv_a_norm = lax.rsqrt(jnp.maximum(a_sq, NORM_CLAMP * NORM_CLAMP))
    proj_scale = jnp.where(a_sq > maxnorm * maxnorm, maxnorm * inv_a_norm, 1.0)  # (TB, 1)

    # ---- fused tail: out = leaky_relu((A*mv + Bc*b_h) * inv_denom * proj_scale, 0.2) ----
    s_mx = A * mv_scale * inv_denom * proj_scale                      # (TB, 1)
    s_bh = Bc * inv_denom * proj_scale                                # (TB, 1)
    out = mx * s_mx + b_h * s_bh                                      # (TB, OUTP)
    o_ref[...] = jnp.where(out >= 0.0, out, 0.2 * out).astype(o_ref.dtype)


def _round_up(n, m):
    return ((n + m - 1) // m) * m


def _vmem_capacity_bytes():
    try:
        return int(pltpu.get_tpu_info().vmem_capacity_bytes)
    except Exception:
        return 64 * 1024 * 1024   # conservative fallback (v7x per-TC VMEM)


def hyp_equalized_linear(x, weight, bias, *, c, w_mul, b_mul, block_b=1024):
    """Pallas forward for HypEqualizedLinear (bias=True path, the module default).

    x: (B, IN), weight: (OUT, IN), bias: (OUT,)
    """
    # TODO(synk): bias=False path (project(mv) only, no mobius_add) not implemented.
    B, IN = x.shape
    OUT, IN_w = weight.shape
    assert IN == IN_w

    # ---- wrapper-side prep (one-time per call, pure JAX) ----
    # lane-dense output: pad OUT to a multiple of 128 (padding columns stay exactly 0)
    OUTP = _round_up(OUT, 128)
    # fold w_mul into the resident weight and keep it bf16: default-precision MXU already
    # does a single bf16 pass on f32 operands, so this halves weight bytes at no extra cost.
    w_t = (jnp.transpose(weight).astype(jnp.float32)
           * jnp.float32(w_mul)).astype(jnp.bfloat16)                 # (IN, OUT)
    if OUTP != OUT:
        w_t = jnp.pad(w_t, ((0, 0), (0, OUTP - OUT)))

    # hoist the input-independent bias path: b_h = expmap0(bias * b_mul, c), y2 = ||b_h||^2
    sqrt_c = math.sqrt(float(c))
    b = (bias.astype(jnp.float32) * jnp.float32(b_mul)).reshape(1, OUT)
    b_norm = jnp.maximum(jnp.sqrt(jnp.sum(b * b, axis=-1, keepdims=True)), NORM_CLAMP)
    b_h = jnp.tanh(sqrt_c * b_norm) * b / (sqrt_c * b_norm)           # (1, OUT)
    if OUTP != OUT:
        b_h = jnp.pad(b_h, ((0, 0), (0, OUTP - OUT)))
    y2 = jnp.sum(b_h * b_h, axis=-1, keepdims=True)                   # (1, 1), SMEM scalar

    # ---- batch tiling: big tiles, but >= 2 grid steps when possible (v7x megacore) ----
    x_isz = x.dtype.itemsize
    o_isz = x.dtype.itemsize

    def footprint(tb):
        return (2 * tb * IN * x_isz            # x tile, double-buffered
                + 2 * tb * OUTP * o_isz        # out tile, double-buffered
                + 2 * IN * OUTP * 2            # bf16 resident weight (pipeline buffers)
                + 2 * OUTP * 4 + 128           # b_h + y2
                + 8 * tb * OUTP * 4)           # in-kernel f32 temporaries (headroom)

    vmem_cap = _vmem_capacity_bytes()
    budget = (vmem_cap * 3) // 4               # ~48 MiB on v7x, ~96 MiB on v5e/v6e

    tb = min(int(block_b), _round_up(B, 8))
    if B > 8:
        tb = min(tb, _round_up(pl.cdiv(B, 2), 8))   # >= 2 grid steps -> both TCs on v7x
    tb = max(8, (tb // 8) * 8)                      # sublane multiple of 8
    while tb > 8 and footprint(tb) > budget:
        tb = max(8, ((tb // 2) // 8) * 8)

    n_steps = pl.cdiv(B, tb)
    BP = n_steps * tb

    # keep x in its native dtype; pad (zeros) only when the last tile is ragged
    xp = x if BP == B else jnp.pad(x, ((0, BP - B), (0, 0)))

    kern = functools.partial(_hyp_eq_linear_kernel, c=float(c), c_add=1.0)

    vmem_limit = int(min(budget, max(32 * 1024 * 1024, 2 * footprint(tb))))

    out_p = pl.pallas_call(
        kern,
        out_shape=jax.ShapeDtypeStruct((BP, OUTP), x.dtype),
        grid=(n_steps,),
        in_specs=[
            pl.BlockSpec((tb, IN), lambda i: (i, 0)),             # x tile
            pl.BlockSpec((IN, OUTP), lambda i: (0, 0)),           # resident bf16 weight
            pl.BlockSpec((1, OUTP), lambda i: (0, 0)),            # resident b_h
            pl.BlockSpec(memory_space=pltpu.MemorySpace.SMEM),    # y2 scalar
        ],
        out_specs=pl.BlockSpec((tb, OUTP), lambda i: (i, 0)),
        compiler_params=pltpu.CompilerParams(
            dimension_semantics=("parallel",),
            vmem_limit_bytes=vmem_limit,
        ),
    )(xp, w_t, b_h, y2)

    if BP == B and OUTP == OUT:
        return out_p
    return out_p[:B, :OUT]


# ------------------------------ pure-JAX reference ------------------------------
def _artanh_ref(x):
    x = jnp.clip(x, -1.0 + ARTANH_EPS, 1.0 - ARTANH_EPS)
    return 0.5 * (jnp.log(1.0 + x) - jnp.log(1.0 - x))


def _reference(x, weight, bias, *, c, w_mul, b_mul):
    sqrt_c = math.sqrt(c)
    w = weight * w_mul
    b = bias * b_mul
    mx = x @ w.T
    x_norm = jnp.maximum(jnp.linalg.norm(x, axis=-1, keepdims=True), MIN_NORM)
    mx_norm = jnp.maximum(jnp.linalg.norm(mx, axis=-1, keepdims=True), MIN_NORM)
    res_c = jnp.tanh(mx_norm / x_norm * _artanh_ref(sqrt_c * x_norm)) * mx / (mx_norm * sqrt_c)
    mv = jnp.where(jnp.all(mx == 0.0, axis=-1, keepdims=True), 0.0, res_c)
    b_norm = jnp.maximum(jnp.linalg.norm(b, axis=-1, keepdims=True), NORM_CLAMP)
    b_h = jnp.tanh(sqrt_c * b_norm) * b / (sqrt_c * b_norm)
    c_add = 1.0   # bug-compatible: original forward omits c in mobius_add
    x2 = jnp.sum(mv * mv, -1, keepdims=True)
    y2 = jnp.sum(b_h * b_h, -1, keepdims=True)
    xy = jnp.sum(mv * b_h, -1, keepdims=True)
    num = (1 + 2 * c_add * xy + c_add * y2) * mv + (1 - c_add * x2) * b_h
    den = 1 + 2 * c_add * xy + c_add ** 2 * x2 * y2
    added = num / (den + MOBADD_EPS)
    a_norm = jnp.maximum(jnp.linalg.norm(added, axis=-1, keepdims=True), NORM_CLAMP)
    maxnorm = (1 - PROJ_EPS) / sqrt_c
    proj = jnp.where(a_norm > maxnorm, added / a_norm * maxnorm, added)
    return jnp.where(proj >= 0, proj, 0.2 * proj)


if __name__ == "__main__":
    # Module hyperparameters (matching __init__ defaults):
    IN, OUT = 32, 64
    B = 256                    # small batch; tile logic gives tb=128 -> grid of 2 (both v7x TCs)
    c = 1.0
    gain = 2 ** 0.5
    use_wscale = False
    lrmul = 1.0

    he_std = gain * IN ** (-0.5)
    if use_wscale:
        init_std = 1.0 / lrmul
        w_mul = he_std * lrmul
    else:
        init_std = he_std / lrmul
        w_mul = lrmul * 0.1
    b_mul = lrmul * 0.1

    key = jax.random.PRNGKey(0)
    kx, kw, kb = jax.random.split(key, 3)
    # inputs live inside the unit Poincare ball -> scale them down
    x = jax.random.normal(kx, (B, IN), dtype=jnp.float32) * 0.1
    weight = jax.random.normal(kw, (OUT, IN), dtype=jnp.float32) * init_std
    bias_zero = jnp.zeros((OUT,), dtype=jnp.float32)               # module __init__ zero-inits
    bias_rand = jax.random.normal(kb, (OUT,), dtype=jnp.float32)   # exercise non-trivial bias path

    for bias in (bias_zero, bias_rand):
        out = hyp_equalized_linear(x, weight, bias, c=c, w_mul=w_mul, b_mul=b_mul)
        out = jax.block_until_ready(out)
        ref = _reference(x, weight, bias, c=c, w_mul=w_mul, b_mul=b_mul)
        assert out.shape == (B, OUT)
        # tolerance accounts for the single-pass bf16 MXU weight and the approx EUP
        # reciprocals (documented, ~1e-3-level relative) vs. the pure-f32 reference
        assert jnp.allclose(out, ref, atol=5e-4, rtol=5e-3), "mismatch vs pure-JAX reference"

    print("KERNEL_OK")
</pallas_src>

<mosaic_0001>
module attributes {stable_mosaic.version = 11 : i64} {
  func.func @_hyp_eq_linear_kernel(%arg0: i32, %arg1: memref<128x32xf32, #tpu.memory_space<vmem>>, %arg2: memref<32x128xbf16, #tpu.memory_space<vmem>>, %arg3: memref<1x128xf32, #tpu.memory_space<vmem>>, %arg4: memref<1x1xf32, #tpu.memory_space<smem>>, %arg5: memref<128x128xf32, #tpu.memory_space<vmem>>) attributes {dimension_semantics = [#tpu.dimension_semantics<parallel>], iteration_bounds = array<i64: 2>, scalar_prefetch = 0 : i64, scratch_operands = 0 : i64, tpu.core_type = #tpu.core_type<tc>, window_params = [{transform_indices = @transform_0, window_bounds = array<i64: 128, 32>}, {pipeline_mode = #tpu.pipeline_mode<synchronous>, transform_indices = @transform_1, window_bounds = array<i64: 32, 128>}, {pipeline_mode = #tpu.pipeline_mode<synchronous>, transform_indices = @transform_2, window_bounds = array<i64: 1, 128>}, {transform_indices = @transform_3, window_bounds = array<i64: 1, 1>}, {transform_indices = @transform_4, window_bounds = array<i64: 128, 128>}]} {
    %c0 = arith.constant 0 : index
    %c0_0 = arith.constant 0 : index
    %0 = vector.load %arg1[%c0, %c0_0] : memref<128x32xf32, #tpu.memory_space<vmem>>, vector<128x32xf32>
    %c0_1 = arith.constant 0 : index
    %c0_2 = arith.constant 0 : index
    %1 = vector.load %arg3[%c0_1, %c0_2] : memref<1x128xf32, #tpu.memory_space<vmem>>, vector<1x128xf32>
    %c0_3 = arith.constant 0 : index
    %c0_4 = arith.constant 0 : index
    %2 = memref.load %arg4[%c0_3, %c0_4] : memref<1x1xf32, #tpu.memory_space<smem>>
    %c0_5 = arith.constant 0 : index
    %c0_6 = arith.constant 0 : index
    %3 = vector.load %arg2[%c0_5, %c0_6] : memref<32x128xbf16, #tpu.memory_space<vmem>>, vector<32x128xbf16>
    %cst = arith.constant dense<0.000000e+00> : vector<128x128xf32>
    %4 = tpu.matmul %0, %3, %cst {dimension_numbers = #tpu.dot_dimension_numbers<[1], [0], [0], [1], [0, 0, 1, 1], [], []>} : vector<128x32xf32>, vector<32x128xbf16>, vector<128x128xf32> -> vector<128x128xf32>
    %5 = arith.mulf %0, %0 : vector<128x32xf32>
    %cst_7 = arith.constant dense<0.000000e+00> : vector<128xf32>
    %6 = vector.multi_reduction <add>, %5, %cst_7 [1] : vector<128x32xf32> to vector<128xf32>
    %7 = vector.shape_cast %6 : vector<128xf32> to vector<128x1xf32>
    %8 = arith.mulf %4, %4 : vector<128x128xf32>
    %cst_8 = arith.constant dense<0.000000e+00> : vector<128xf32>
    %9 = vector.multi_reduction <add>, %8, %cst_8 [1] : vector<128x128xf32> to vector<128xf32>
    %10 = vector.shape_cast %9 : vector<128xf32> to vector<128x1xf32>
    %cst_9 = arith.constant 1.000000e-30 : f32
    %11 = vector.broadcast %cst_9 : f32 to vector<128x1xf32>
    %12 = arith.maximumf %7, %11 : vector<128x1xf32>
    %13 = math.rsqrt %12 : vector<128x1xf32>
    %cst_10 = arith.constant 1.000000e-30 : f32
    %14 = vector.broadcast %cst_10 : f32 to vector<128x1xf32>
    %15 = arith.maximumf %10, %14 : vector<128x1xf32>
    %16 = math.rsqrt %15 : vector<128x1xf32>
    %17 = arith.mulf %7, %13 : vector<128x1xf32>
    %18 = arith.mulf %10, %16 : vector<128x1xf32>
    %cst_11 = arith.constant 1.000000e+00 : f32
    %19 = vector.broadcast %cst_11 : f32 to vector<128x1xf32>
    %20 = arith.mulf %19, %17 : vector<128x1xf32>
    %cst_12 = arith.constant -0.999989986 : f32
    %cst_13 = arith.constant 0.999989986 : f32
    %21 = vector.broadcast %cst_12 : f32 to vector<128x1xf32>
    %22 = arith.maximumf %21, %20 : vector<128x1xf32>
    %23 = vector.broadcast %cst_13 : f32 to vector<128x1xf32>
    %24 = arith.minimumf %23, %22 : vector<128x1xf32>
    %cst_14 = arith.constant 1.000000e+00 : f32
    %25 = vector.broadcast %cst_14 : f32 to vector<128x1xf32>
    %26 = arith.addf %25, %24 : vector<128x1xf32>
    %cst_15 = arith.constant 1.000000e+00 : f32
    %27 = vector.broadcast %cst_15 : f32 to vector<128x1xf32>
    %28 = arith.subf %27, %24 : vector<128x1xf32>
    %29 = tpu.reciprocal %28 {approx = true} : vector<128x1xf32> -> vector<128x1xf32>
    %30 = arith.mulf %26, %29 : vector<128x1xf32>
    %31 = math.log %30 : vector<128x1xf32>
    %cst_16 = arith.constant 5.000000e-01 : f32
    %32 = vector.broadcast %cst_16 : f32 to vector<128x1xf32>
    %33 = arith.mulf %32, %31 : vector<128x1xf32>
    %34 = arith.mulf %18, %13 : vector<128x1xf32>
    %35 = arith.mulf %34, %33 : vector<128x1xf32>
    %36 = math.tanh %35 : vector<128x1xf32>
    %cst_17 = arith.constant 0.000000e+00 : f32
    %37 = vector.broadcast %cst_17 : f32 to vector<128x1xf32>
    %38 = arith.cmpf oeq, %10, %37 : vector<128x1xf32>
    %39 = arith.mulf %36, %16 : vector<128x1xf32>
    %cst_18 = arith.constant 1.000000e+00 : f32
    %40 = vector.broadcast %cst_18 : f32 to vector<128x1xf32>
    %41 = arith.mulf %39, %40 : vector<128x1xf32>
    %cst_19 = arith.constant 0.000000e+00 : f32
    %42 = vector.broadcast %cst_19 : f32 to vector<128x1xf32>
    %43 = arith.select %38, %42, %41 : vector<128x1xi1>, vector<128x1xf32>
    %44 = arith.mulf %36, %36 : vector<128x1xf32>
    %cst_20 = arith.constant 1.000000e+00 : f32
    %45 = vector.broadcast %cst_20 : f32 to vector<128x1xf32>
    %46 = arith.mulf %44, %45 : vector<128x1xf32>
    %cst_21 = arith.constant 0.000000e+00 : f32
    %47 = vector.broadcast %cst_21 : f32 to vector<128x1xf32>
    %48 = arith.select %38, %47, %46 : vector<128x1xi1>, vector<128x1xf32>
    %49 = vector.broadcast %1 : vector<1x128xf32> to vector<128x128xf32>
    %50 = arith.mulf %4, %49 : vector<128x128xf32>
    %cst_22 = arith.constant dense<0.000000e+00> : vector<128xf32>
    %51 = vector.multi_reduction <add>, %50, %cst_22 [1] : vector<128x128xf32> to vector<128xf32>
    %52 = vector.shape_cast %51 : vector<128xf32> to vector<128x1xf32>
    %53 = arith.mulf %43, %52 : vector<128x1xf32>
    %cst_23 = arith.constant 2.000000e+00 : f32
    %cst_24 = arith.constant 1.000000e+00 : f32
    %54 = arith.mulf %cst_23, %cst_24 : f32
    %55 = vector.broadcast %54 : f32 to vector<128x1xf32>
    %56 = arith.mulf %55, %53 : vector<128x1xf32>
    %cst_25 = arith.constant 1.000000e+00 : f32
    %57 = vector.broadcast %cst_25 : f32 to vector<128x1xf32>
    %58 = arith.addf %57, %56 : vector<128x1xf32>
    %cst_26 = arith.constant 1.000000e+00 : f32
    %59 = arith.mulf %cst_26, %2 : f32
    %60 = vector.broadcast %59 : f32 to vector<128x1xf32>
    %61 = arith.addf %58, %60 : vector<128x1xf32>
    %cst_27 = arith.constant 1.000000e+00 : f32
    %62 = vector.broadcast %cst_27 : f32 to vector<128x1xf32>
    %63 = arith.mulf %62, %48 : vector<128x1xf32>
    %cst_28 = arith.constant 1.000000e+00 : f32
    %64 = vector.broadcast %cst_28 : f32 to vector<128x1xf32>
    %65 = arith.subf %64, %63 : vector<128x1xf32>
    %cst_29 = arith.constant 2.000000e+00 : f32
    %cst_30 = arith.constant 1.000000e+00 : f32
    %66 = arith.mulf %cst_29, %cst_30 : f32
    %67 = vector.broadcast %66 : f32 to vector<128x1xf32>
    %68 = arith.mulf %67, %53 : vector<128x1xf32>
    %cst_31 = arith.constant 1.000000e+00 : f32
    %69 = vector.broadcast %cst_31 : f32 to vector<128x1xf32>
    %70 = arith.addf %69, %68 : vector<128x1xf32>
    %cst_32 = arith.constant 1.000000e+00 : f32
    %cst_33 = arith.constant 1.000000e+00 : f32
    %71 = arith.mulf %cst_32, %cst_33 : f32
    %72 = vector.broadcast %71 : f32 to vector<128x1xf32>
    %73 = arith.mulf %72, %48 : vector<128x1xf32>
    %74 = vector.broadcast %2 : f32 to vector<128x1xf32>
    %75 = arith.mulf %73, %74 : vector<128x1xf32>
    %76 = arith.addf %70, %75 : vector<128x1xf32>
    %cst_34 = arith.constant 9.99999974E-6 : f32
    %77 = vector.broadcast %cst_34 : f32 to vector<128x1xf32>
    %78 = arith.addf %76, %77 : vector<128x1xf32>
    %79 = tpu.reciprocal %78 {approx = true} : vector<128x1xf32> -> vector<128x1xf32>
    %80 = arith.mulf %61, %61 : vector<128x1xf32>
    %81 = arith.mulf %80, %48 : vector<128x1xf32>
    %cst_35 = arith.constant 2.000000e+00 : f32
    %82 = vector.broadcast %cst_35 : f32 to vector<128x1xf32>
    %83 = arith.mulf %82, %61 : vector<128x1xf32>
    %84 = arith.mulf %83, %65 : vector<128x1xf32>
    %85 = arith.mulf %84, %53 : vector<128x1xf32>
    %86 = arith.addf %81, %85 : vector<128x1xf32>
    %87 = arith.mulf %65, %65 : vector<128x1xf32>
    %88 = vector.broadcast %2 : f32 to vector<128x1xf32>
    %89 = arith.mulf %87, %88 : vector<128x1xf32>
    %90 = arith.addf %86, %89 : vector<128x1xf32>
    %91 = arith.mulf %79, %79 : vector<128x1xf32>
    %92 = arith.mulf %90, %91 : vector<128x1xf32>
    %cst_36 = arith.constant 1.000000e-10 : f32
    %93 = vector.broadcast %cst_36 : f32 to vector<128x1xf32>
    %94 = arith.maximumf %92, %93 : vector<128x1xf32>
    %95 = math.rsqrt %94 : vector<128x1xf32>
    %cst_37 = arith.constant 9.990000e-01 : f32
    %cst_38 = arith.constant 9.990000e-01 : f32
    %96 = arith.mulf %cst_37, %cst_38 : f32
    %97 = vector.broadcast %96 : f32 to vector<128x1xf32>
    %98 = arith.cmpf ogt, %92, %97 : vector<128x1xf32>
    %cst_39 = arith.constant 9.990000e-01 : f32
    %99 = vector.broadcast %cst_39 : f32 to vector<128x1xf32>
    %100 = arith.mulf %99, %95 : vector<128x1xf32>
    %cst_40 = arith.constant 1.000000e+00 : f32
    %101 = vector.broadcast %cst_40 : f32 to vector<128x1xf32>
    %102 = arith.select %98, %100, %101 : vector<128x1xi1>, vector<128x1xf32>
    %103 = arith.mulf %61, %43 : vector<128x1xf32>
    %104 = arith.mulf %103, %79 : vector<128x1xf32>
    %105 = arith.mulf %104, %102 : vector<128x1xf32>
    %106 = arith.mulf %65, %79 : vector<128x1xf32>
    %107 = arith.mulf %106, %102 : vector<128x1xf32>
    %108 = vector.broadcast %105 : vector<128x1xf32> to vector<128x128xf32>
    %109 = arith.mulf %4, %108 : vector<128x128xf32>
    %110 = vector.broadcast %1 : vector<1x128xf32> to vector<128x128xf32>
    %111 = vector.broadcast %107 : vector<128x1xf32> to vector<128x128xf32>
    %112 = arith.mulf %110, %111 : vector<128x128xf32>
    %113 = arith.addf %109, %112 : vector<128x128xf32>
    %cst_41 = arith.constant 0.000000e+00 : f32
    %114 = vector.broadcast %cst_41 : f32 to vector<128x128xf32>
    %115 = arith.cmpf oge, %113, %114 : vector<128x128xf32>
    %cst_42 = arith.constant 2.000000e-01 : f32
    %116 = vector.broadcast %cst_42 : f32 to vector<128x128xf32>
    %117 = arith.mulf %116, %113 : vector<128x128xf32>
    %118 = arith.select %115, %113, %117 : vector<128x128xi1>, vector<128x128xf32>
    %c0_43 = arith.constant 0 : index
    %c0_44 = arith.constant 0 : index
    %119 = vector.load %arg5[%c0_43, %c0_44] : memref<128x128xf32, #tpu.memory_space<vmem>>, vector<128x128xf32>
    tpu.vector_store %arg5[%c0_43, %c0_44], %118 {strides = array<i32>} : memref<128x128xf32, #tpu.memory_space<vmem>>, vector<128x128xf32>,
    return
  }
  func.func @transform_0(%arg0: i32) -> (i32, i32) {
    %c0_i32 = arith.constant 0 : i32
    %c0_i32_0 = arith.constant 0 : i32
    return %arg0, %c0_i32 : i32, i32
  }
  func.func @transform_1(%arg0: i32) -> (i32, i32) {
    %c0_i32 = arith.constant 0 : i32
    %c0_i32_0 = arith.constant 0 : i32
    %c0_i32_1 = arith.constant 0 : i32
    return %c0_i32, %c0_i32_0 : i32, i32
  }
  func.func @transform_2(%arg0: i32) -> (i32, i32) {
    %c0_i32 = arith.constant 0 : i32
    %c0_i32_0 = arith.constant 0 : i32
    %c0_i32_1 = arith.constant 0 : i32
    return %c0_i32, %c0_i32_0 : i32, i32
  }
  func.func @transform_3(%arg0: i32) -> (i32, i32) {
    %c0_i32 = arith.constant 0 : i32
    %c0_i32_0 = arith.constant 0 : i32
    %c0_i32_1 = arith.constant 0 : i32
    return %c0_i32, %c0_i32_0 : i32, i32
  }
  func.func @transform_4(%arg0: i32) -> (i32, i32) {
    %c0_i32 = arith.constant 0 : i32
    %c0_i32_0 = arith.constant 0 : i32
    return %arg0, %c0_i32 : i32, i32
  }
}

</mosaic_0001>

<bundles_post_ra>
// kernel: tpu_custom_call.1
= control target key start
LH: loop header
LB: loop body
LE: loop exit
PB: predicated region body
PF: predicated region fallthrough
CT: control target
= control target key end

     0   :  { %s3357_s0 = inlined_call_operand.vmem [shape: f32[256,32], index: 0, kind: input, shape index: {}]   ;;  %s3358_s1 = inlined_call_operand.vmem [shape: bf16[32,128], index: 1, kind: input, shape index: {}]   ;;  %s3359_s2 = inlined_call_operand.vmem [shape: f32[1,128], index: 2, kind: input, shape index: {}]   ;;  %s3360_s3 = inlined_call_operand.<no memory space> [shape: f32[1,1], index: 3, kind: input, shape index: {}]   ;;  %s3361_s4 = inlined_call_operand.hbm [shape: f32[256,128], index: 4, kind: output, shape index: {}]  }
   0x1   :  { %9 = sst [smem:[#allocation2]] %s3360_s3 }
   0x2   :  { %10 = vsyncpa [#allocation4], 0 }
   0x3   :  { %12 = vsyncpa [#allocation4 + $0x1], 0  ;;  %s2060_s17 = smov 0   ;;  %s2062_s18 = smov 0  }
   0x4   :  { %s2064_s19 = smov 0   ;;  %s2066_s20 = smov 0  }
   0x5 LB: > { %s2081_s3 = sadd.s32 4294967295, %s2027_s20   ;;  %s1600_s21 = sadd.s32 4294967294, %s2027_s20   ;;  %s2027_s20 = sphi %s2066_s20, %s3458_s20   ;;  %s2023_s19 = sphi %s2064_s19, %s3457_s19   ;;  %s2019_s18 = sphi %s2062_s18, %s3456_s18   ;;  %s2015_s17 = sphi %s2060_s17, %s3455_s17  }
   0x6   : > { %s2085_s22 = sadd.s32 1, %s2027_s20   ;;  %s114_s23 = sadd.s32 1, %s2023_s19 }
   0x7   : > { %s111_s24 = ssub.s32 %s2027_s20, %s2085_s22  ;;  %p124_p0 = scmp.ne.s32.totalorder %s2023_s19, %s2019_s18 }
   0x8   : > { %p112_p1 = scmp.eq.s32.totalorder %s111_s24, 0  ;;  %p125_p2 = scmp.eq.s32.totalorder %s2081_s3, 1 }
   0x9   : > { %p130_p3 = scmp.ne.s32.totalorder %s2019_s18, %s2015_s17  ;;  %p131_p4 = scmp.eq.s32.totalorder %s1600_s21, 1 }
   0xa   : > { %s2096_s25 = scalar_select %p112_p1, %s2023_s19, %s114_s23  }
   0xb   : > { %p2098_p5 = por %p125_p2, %p124_p0  ;;  %p2102_p6 = por %p131_p4, %p130_p3 }
   0xc   : > { %p1603_p7 = scmp.ge.s32.totalorder %s2027_s20, 1  ;;  %p167_p8 = scmp.lt.s32.totalorder %s2027_s20, 3 }
   0xe   : > { %p168_p9 = pnand %p1603_p7, %p167_p8 }
  0x10   : > { %171 = sbr.rel (%p168_p9) target bundleno = 614 (0x266), region = 36 }
  0x15   : > { %v1739_v0 = vld [vmem:[%s3358_s1 + $0x8] sm:$0xff]   ;;  %s1605_s30 = sshll.u32 %s2081_s3, 4  ;;  %v1740_v1 = vld [vmem:[%s3358_s1] sm:$0xff]   ;;  %vm235_vm0 = vcmask 261120   ;;  %s2525_s13 = sld [smem:[#allocation2]] }
  0x16   : > { %p194_p10 = scmp.lt.s32.totalorder %s1605_s30, 31  ;;  %1666 = vmatprep.subr.bf16.mxu0 %v1739_v0  ;;  %1694 = vmatprep.subr.bf16.mxu1 %v1739_v0  ;;  %s190_s14 = sand.u32 1, %s2019_s18  }
  0x17   : > { %1667 = vmatpush3.bf16.msra.mxu0 %v1739_v0  ;;  %1696 = vmatpush3.bf16.msra.mxu1 %v1739_v0  ;;  %s1604_s21 = sshll.u32 %s190_s14, 7  ;;  %s1647_s29 = sshll.u32 %s2081_s3, 11 }
  0x18   : > { %s3460_s30 = smov (!%p194_p10, %s1605_s30), 31  ;;  %1668 = vmatprep.subr.bf16.mxu0 %v1740_v1  ;;  %1695 = vmatprep.subr.bf16.mxu1 %v1740_v1  ;;  %s2867_s23 = scalar_lea.vmem [#allocation3], %s1604_s21 }
  0x19   : > { %s1606_s7 = sshll.u32 %s3460_s30, 3  ;;  %s1538_s30 = sshll.u32 %s2867_s23, 4  ;;  %s3312_s30 = int_to_ptr.vmem [resolvable:$true] %s1538_s30 }
  0x1a   : > { %s2118_s10 = scalar_lea.vmem %s3357_s0, %s1606_s7  ;;  %s3310_s7 = scalar_lea.hbm %s3361_s4, %s1647_s29 }
  0x1b   : > { %1669 = vmatpush3.bf16.msra.mxu0 %v1740_v1  ;;  %1697 = vmatpush3.bf16.msra.mxu1 %v1740_v1  ;;  %v201_v2 = vld [vmem:[%s2118_s10] sm:$0xff]  ;;  %v202_v3 = vld [vmem:[%s2118_s10 + $0x8] sm:$0xff]  ;;  %v203_v7 = vld [vmem:[%s2118_s10 + $0x10] sm:$0xff]  ;;  %s3317_s8 = scalar_lea.sflag [#allocation4], %s190_s14  ;;  %s1967_s3 = scalar_lea.vmem %s3312_s30, 2048 }
  0x1c   : > { %v209_v4 = vld [vmem:[%s2118_s10 + $0x40] sm:$0xff]  ;;  %1670 = vmatprep.mubr.msk.f32.mxu0 %vm235_vm0, %v201_v2  ;;  %v397_v5 = vmul.f32 %v201_v2, %v201_v2  ;;  %v210_v6 = vld [vmem:[%s2118_s10 + $0x48] sm:$0xff]  ;;  %v204_v8 = vld [vmem:[%s2118_s10 + $0x18] sm:$0xff]  ;;  %v399_v10 = vmul.f32 %v203_v7, %v203_v7  ;;  %v398_v12 = vmul.f32 %v202_v3, %v202_v3  ;;  %p1968_p11 = scmp.ne.s32.totalorder %s3312_s30, %s1967_s3  ;;  %s2029_s9 = smov [#allocation3]  }
  0x1d   : > { %1682 = vmatprep.mubr.msk.f32.mxu1 %vm235_vm0, %v209_v4  ;;  %v211_v9 = vld [vmem:[%s2118_s10 + $0x50] sm:$0xff]  ;;  %v400_v11 = vmul.f32 %v204_v8, %v204_v8  ;;  %v212_v14 = vld [vmem:[%s2118_s10 + $0x58] sm:$0xff]  ;;  %v205_v16 = vld [vmem:[%s2118_s10 + $0x20] sm:$0xff]  ;;  %v405_v32 = vmul.f32 %v209_v4, %v209_v4  ;;  %v406_v35 = vmul.f32 %v210_v6, %v210_v6 }
  0x1e   : > { %1671 = vmatmul.mubr.msk.f32.vlgmr.msra.gmra.mxu0 %vm235_vm0, %v202_v3  ;;  %1683 = vmatmul.mubr.msk.f32.vlgmr.msra.gmra.mxu1 %vm235_vm0, %v210_v6  ;;  %v413_v13 = vsel %vm235_vm0, %v397_v5, 0.0  ;;  %v419_v15 = vsel %vm235_vm0, %v399_v10, 0.0  ;;  %v206_v17 = vld [vmem:[%s2118_s10 + $0x28] sm:$0xff]  ;;  %v213_v18 = vld [vmem:[%s2118_s10 + $0x60] sm:$0xff]  ;;  %v416_v20 = vsel %vm235_vm0, %v398_v12, 0.0  ;;  %v401_v22 = vmul.f32 %v205_v16, %v205_v16  ;;  %v207_v24 = vld [vmem:[%s2118_s10 + $0x30] sm:$0xff]  ;;  %p1969_p12 = pnand %p1968_p11, %p2098_p5 }
  0x1f   : > { %1673 = vmatprep.mubr.msk.f32.mxu0 %vm235_vm0, %v203_v7  ;;  %1685 = vmatprep.mubr.msk.f32.mxu1 %vm235_vm0, %v211_v9  ;;  %v422_v19 = vsel %vm235_vm0, %v400_v11, 0.0  ;;  %v402_v21 = vmul.f32 %v206_v17, %v206_v17  ;;  %v214_v23 = vld [vmem:[%s2118_s10 + $0x68] sm:$0xff]  ;;  %v208_v25 = vld [vmem:[%s2118_s10 + $0x38] sm:$0xff]  ;;  %v215_v26 = vld [vmem:[%s2118_s10 + $0x70] sm:$0xff]  ;;  %v403_v30 = vmul.f32 %v207_v24, %v207_v24  ;;  %v440_v36 = vsel %vm235_vm0, %v406_v35, 0.0 }
  0x20   : > { %420 = vadd.xlane.f32.xlu1 %v419_v15  ;;  %414 = vadd.xlane.f32.xlu0 %v413_v13  ;;  %v425_v28 = vsel %vm235_vm0, %v401_v22, 0.0  ;;  %v404_v29 = vmul.f32 %v208_v25, %v208_v25  ;;  %v216_v31 = vld [vmem:[%s2118_s10 + $0x78] sm:$0xff]  ;;  %v437_v37 = vsel %vm235_vm0, %v405_v32, 0.0  ;;  %v408_v38 = vmul.f32 %v212_v14, %v212_v14  ;;  %p1970_p13 = pneg %p1969_p12  ;;  %s1971_s10 = sshll.u32 %s2029_s9, 4  ;;  %s1972_s10 = int_to_ptr.vmem [resolvable:$false] %s1971_s10 }
  0x21   : > { %v428_v27 = vsel %vm235_vm0, %v402_v21, 0.0  ;;  %v431_v34 = vsel %vm235_vm0, %v403_v30, 0.0  ;;  %v407_v39 = vmul.f32 %v211_v9, %v211_v9  ;;  %v410_v42 = vmul.f32 %v214_v23, %v214_v23  ;;  %s1973_s11 = scalar_lea.vmem %s1972_s10, 4096  ;;  %p1974_p0 = scmp.lt.s32.totalorder %s3312_s30, %s1972_s10 }
  0x22   : > { %1674 = vmatmul.mubr.msk.f32.gmra.mxu0 %vm235_vm0, %v204_v8  ;;  %1686 = vmatmul.mubr.msk.f32.gmra.mxu1 %vm235_vm0, %v212_v14  ;;  %v434_v33 = vsel %vm235_vm0, %v404_v29, 0.0  ;;  %v446_v40 = vsel %vm235_vm0, %v408_v38, 0.0  ;;  %v409_v43 = vmul.f32 %v213_v18, %v213_v18  ;;  %v412_v46 = vmul.f32 %v216_v31, %v216_v31  ;;  %p1975_p1 = scmp.lt.s32.totalorder %s1973_s11, %s1967_s3 }
  0x23   : > { %1676 = vmatprep.mubr.msk.f32.mxu0 %vm235_vm0, %v205_v16  ;;  %1688 = vmatprep.mubr.msk.f32.mxu1 %vm235_vm0, %v213_v18  ;;  %v443_v41 = vsel %vm235_vm0, %v407_v39, 0.0  ;;  %v452_v44 = vsel %vm235_vm0, %v410_v42, 0.0  ;;  %v411_v47 = vmul.f32 %v215_v26, %v215_v26 }
  0x24   : > { %423 = vadd.xlane.f32.xlu1 %v422_v19  ;;  %417 = vadd.xlane.f32.xlu0 %v416_v20  ;;  %v449_v45 = vsel %vm235_vm0, %v409_v43, 0.0  ;;  %v458_v48 = vsel %vm235_vm0, %v412_v46, 0.0  ;;  %p1976_p2 = por %p1975_p1, %p1974_p0 }
  0x25   : > { %v455_v49 = vsel %vm235_vm0, %v411_v47, 0.0 }
  0x26   : > { %1677 = vmatmul.mubr.msk.f32.gmra.mxu0 %vm235_vm0, %v206_v17  ;;  %1689 = vmatmul.mubr.msk.f32.gmra.mxu1 %vm235_vm0, %v214_v23  ;;  %v1641_v17 = vld [vmem:[%s3359_s2] ss:$0 sm:$0xff]  ;;  %p1977_p3 = pnand %p1976_p2, %p1970_p13 }
  0x27   : > { %1679 = vmatprep.mubr.msk.f32.mxu0 %vm235_vm0, %v207_v24  ;;  %1691 = vmatprep.mubr.msk.f32.mxu1 %vm235_vm0, %v215_v26 }
  0x28   : > { %429 = vadd.xlane.f32.xlu1 %v428_v27  ;;  %426 = vadd.xlane.f32.xlu0 %v425_v28 }
  0x2a   : > { %1680 = vmatmul.mubr.msk.f32.gmra.mxu0 %vm235_vm0, %v208_v25  ;;  %1692 = vmatmul.mubr.msk.f32.gmra.mxu1 %vm235_vm0, %v216_v31 }
  0x2c   : > { %435 = vadd.xlane.f32.xlu1 %v434_v33  ;;  %432 = vadd.xlane.f32.xlu0 %v431_v34 }
  0x30   : > { %441 = vadd.xlane.f32.xlu1 %v440_v36  ;;  %438 = vadd.xlane.f32.xlu0 %v437_v37 }
  0x34   : > { %447 = vadd.xlane.f32.xlu1 %v446_v40  ;;  %444 = vadd.xlane.f32.xlu0 %v443_v41 }
  0x38   : > { %453 = vadd.xlane.f32.xlu1 %v452_v44  ;;  %450 = vadd.xlane.f32.xlu0 %v449_v45 }
  0x3c   : > { %459 = vadd.xlane.f32.xlu1 %v458_v48  ;;  %456 = vadd.xlane.f32.xlu0 %v455_v49 }
  0xa9   : > { %v421_v34 = vpop.xlane.xlu1 %420  ;;  %v415_v36 = vpop.xlane.xlu0 %414 }
  0xaa   : > { %v511_v41 = vmax.f32 %v421_v34, 1e-30  ;;  %v509_v43 = vmax.f32 %v415_v36, 1e-30 }
  0xac   : > { %1741 = vrsqrt.f32 %v511_v41 }
  0xad   : > { %v424_v37 = vpop.xlane.xlu1 %423  ;;  %v418_v38 = vpop.xlane.xlu0 %417  ;;  %1743 = vrsqrt.f32 %v509_v43 }
  0xae   : > { %v512_v45 = vmax.f32 %v424_v37, 1e-30  ;;  %v510_v46 = vmax.f32 %v418_v38, 1e-30 }
  0xb0   : > { %1745 = vrsqrt.f32 %v512_v45 }
  0xb1   : > { %v430_v39 = vpop.xlane.xlu1 %429  ;;  %v427_v40 = vpop.xlane.xlu0 %426  ;;  %1747 = vrsqrt.f32 %v510_v46 }
  0xb2   : > { %v514_v48 = vmax.f32 %v430_v39, 1e-30 }
  0xb4   : > { %1749 = vrsqrt.f32 %v514_v48 }
  0xb5   : > { %v2251_v42 = vpop.xlane.xlu1 %435  ;;  %v2253_v44 = vpop.xlane.xlu0 %432 }
  0xb9   : > { %v442_v47 = vpop.xlane.xlu1 %441  ;;  %v2255_v49 = vpop.xlane.xlu0 %438 }
  0xde   : > { %v2168_v50 = vpop.f32.mrf.mxu0  ;;  %v2170_v51 = vpop.f32.mrf.mxu1 }
  0xdf   : > { %3399 = vst [vmem:[#allocation6_spill] sm:$0xff] %v2170_v51  ;;  %v462_v52 = vmul.f32 %v2168_v50, %v2168_v50  ;;  %v470_v55 = vmul.f32 %v2170_v51, %v2170_v51  ;;  %v884_v19 = vmul.f32 %v2168_v50, %v1641_v17  ;;  %v892_v27 = vmul.f32 %v2170_v51, %v1641_v17 }
  0xe0   : > { %v2174_v53 = vpop.f32.mrf.mxu0  ;;  %v2180_v56 = vpop.f32.mrf.mxu1 }
  0xe1   : > { %479 = vadd.xlane.f32.xlu1 %v462_v52  ;;  %v461_v54 = vmul.f32 %v2174_v53, %v2174_v53  ;;  %3400 = vst [vmem:[#allocation7_spill] sm:$0xff] %v2180_v56  ;;  %v469_v58 = vmul.f32 %v2180_v56, %v2180_v56  ;;  %v883_v20 = vmul.f32 %v1641_v17, %v2174_v53  ;;  %v513_v52 = vmax.f32 %v427_v40, 1e-30 }
  0xe2   : > { %v2182_v57 = vpop.f32.mrf.mxu0  ;;  %v2190_v61 = vpop.f32.mrf.mxu1  ;;  %v891_v26 = vmul.f32 %v1641_v17, %v2180_v56 }
  0xe3   : > { %477 = vadd.xlane.f32.xlu0 %v461_v54  ;;  %v464_v59 = vmul.f32 %v2182_v57, %v2182_v57  ;;  %3402 = vst [vmem:[#allocation9_spill] sm:$0xff] %v2190_v61  ;;  %v472_v63 = vmul.f32 %v2190_v61, %v2190_v61  ;;  %v886_v21 = vmul.f32 %v2182_v57, %v1641_v17  ;;  %v518_v54 = vmax.f32 %v442_v47, 1e-30 }
  0xe4   : > { %v2188_v60 = vpop.f32.mrf.mxu0  ;;  %v2196_v0 = vpop.f32.mrf.mxu1  ;;  %v894_v29 = vmul.f32 %v2190_v61, %v1641_v17  ;;  %1751 = vrsqrt.f32 %v513_v52 }
  0xe5   : > { %495 = vadd.xlane.f32.xlu1 %v470_v55  ;;  %3401 = vst [vmem:[#allocation8_spill] sm:$0xff] %v2188_v60  ;;  %v463_v62 = vmul.f32 %v2188_v60, %v2188_v60  ;;  %3403 = vst [vmem:[#allocation10_spill] sm:$0xff] %v2196_v0  ;;  %v471_v2 = vmul.f32 %v2196_v0, %v2196_v0  ;;  %v885_v22 = vmul.f32 %v1641_v17, %v2188_v60  ;;  %v2257_v55 = vpop.xlane.xlu1 %447 }
  0xe6   : > { %v2198_v1 = vpop.f32.mrf.mxu0  ;;  %v2206_v5 = vpop.f32.mrf.mxu1  ;;  %v893_v28 = vmul.f32 %v1641_v17, %v2196_v0  ;;  %1753 = vrsqrt.f32 %v518_v54 }
  0xe7   : > { %493 = vadd.xlane.f32.xlu0 %v469_v58  ;;  %3404 = vst [vmem:[#allocation11_spill] sm:$0xff] %v2198_v1  ;;  %v466_v3 = vmul.f32 %v2198_v1, %v2198_v1  ;;  %3406 = vst [vmem:[#allocation13_spill] sm:$0xff] %v2206_v5  ;;  %v474_v7 = vmul.f32 %v2206_v5, %v2206_v5  ;;  %v888_v23 = vmul.f32 %v2198_v1, %v1641_v17 }
  0xe8   : > { %v2204_v4 = vpop.f32.mrf.mxu0  ;;  %v2212_v8 = vpop.f32.mrf.mxu1  ;;  %v896_v31 = vmul.f32 %v2206_v5, %v1641_v17  ;;  %v516_v58 = vmax.f32 %v2251_v42, 1e-30 }
  0xe9   : > { %483 = vadd.xlane.f32.xlu1 %v464_v59  ;;  %3405 = vst [vmem:[#allocation12_spill] sm:$0xff] %v2204_v4  ;;  %v465_v6 = vmul.f32 %v2204_v4, %v2204_v4  ;;  %3407 = vst [vmem:[#allocation14_spill] sm:$0xff] %v2212_v8  ;;  %v473_v10 = vmul.f32 %v2212_v8, %v2212_v8  ;;  %v887_v24 = vmul.f32 %v1641_v17, %v2204_v4  ;;  %v2260_v59 = vpop.xlane.xlu0 %444 }
  0xea   : > { %v2214_v9 = vpop.f32.mrf.mxu0  ;;  %v2222_v13 = vpop.f32.mrf.mxu1  ;;  %v895_v30 = vmul.f32 %v1641_v17, %v2212_v8  ;;  %1755 = vrsqrt.f32 %v516_v58 }
  0xeb   : > { %481 = vadd.xlane.f32.xlu0 %v463_v62  ;;  %3408 = vst [vmem:[#allocation15_spill] sm:$0xff] %v2214_v9  ;;  %v468_v11 = vmul.f32 %v2214_v9, %v2214_v9  ;;  %3410 = vst [vmem:[#allocation17_spill] sm:$0xff] %v2222_v13  ;;  %v476_v15 = vmul.f32 %v2222_v13, %v2222_v13  ;;  %v890_v25 = vmul.f32 %v2214_v9, %v1641_v17 }
  0xec   : > { %v2220_v12 = vpop.f32.mrf.mxu0  ;;  %v2228_v16 = vpop.f32.mrf.mxu1  ;;  %v898_v33 = vmul.f32 %v2222_v13, %v1641_v17  ;;  %v515_v62 = vmax.f32 %v2253_v44, 1e-30 }
  0xed   : > { %499 = vadd.xlane.f32.xlu1 %v472_v63  ;;  %3409 = vst [vmem:[#allocation16_spill] sm:$0xff] %v2220_v12  ;;  %v467_v14 = vmul.f32 %v2220_v12, %v2220_v12  ;;  %3411 = vst [vmem:[#allocation18_spill] sm:$0xff] %v2228_v16  ;;  %v475_v18 = vmul.f32 %v2228_v16, %v2228_v16  ;;  %v889_v32 = vmul.f32 %v1641_v17, %v2220_v12  ;;  %v2263_v63 = vpop.eup %1741 }
  0xee   : > { %v897_v35 = vmul.f32 %v1641_v17, %v2228_v16  ;;  %1757 = vrsqrt.f32 %v515_v62 }
  0xef   : > { %497 = vadd.xlane.f32.xlu0 %v471_v2  ;;  %v517_v2 = vmax.f32 %v2255_v49, 1e-30 }
  0xf1   : > { %487 = vadd.xlane.f32.xlu1 %v466_v3  ;;  %v2266_v3 = vpop.xlane.xlu1 %453  ;;  %1759 = vrsqrt.f32 %v517_v2 }
  0xf3   : > { %485 = vadd.xlane.f32.xlu0 %v465_v6  ;;  %v2268_v6 = vpop.eup %1743 }
  0xf4   : > { %v2280_v17 = vmul.f32 %v2268_v6, %v415_v36 }
  0xf5   : > { %503 = vadd.xlane.f32.xlu1 %v474_v7  ;;  %v520_v7 = vmax.f32 %v2257_v55, 1e-30 }
  0xf7   : > { %501 = vadd.xlane.f32.xlu0 %v473_v10  ;;  %v2272_v10 = vmul.f32 %v2263_v63, %v421_v34  ;;  %1761 = vrsqrt.f32 %v520_v7 }
  0xf9   : > { %491 = vadd.xlane.f32.xlu1 %v468_v11  ;;  %v2274_v11 = vpop.xlane.xlu0 %450 }
  0xfb   : > { %489 = vadd.xlane.f32.xlu0 %v467_v14  ;;  %v2276_v14 = vpop.eup %1745 }
  0xfd   : > { %507 = vadd.xlane.f32.xlu1 %v476_v15  ;;  %v519_v15 = vmax.f32 %v2260_v59, 1e-30 }
  0xff   : > { %505 = vadd.xlane.f32.xlu0 %v475_v18  ;;  %v2282_v18 = vpop.eup %1747  ;;  %1763 = vrsqrt.f32 %v519_v15 }
 0x101   : > { %901 = vadd.xlane.f32.xlu1 %v884_v19  ;;  %v522_v19 = vmax.f32 %v2266_v3, 1e-30 }
 0x103   : > { %899 = vadd.xlane.f32.xlu0 %v883_v20  ;;  %v1627_v20 = vclamps-f32 %v2272_v10, 0.99999  ;;  %1765 = vrsqrt.f32 %v522_v19 }
 0x105   : > { %905 = vadd.xlane.f32.xlu1 %v886_v21  ;;  %v2287_v21 = vmul.f32 %v2276_v14, %v424_v37 }
 0x107   : > { %903 = vadd.xlane.f32.xlu0 %v885_v22  ;;  %v2289_v22 = vpop.xlane.xlu1 %459 }
 0x109   : > { %909 = vadd.xlane.f32.xlu1 %v888_v23  ;;  %v2291_v23 = vpop.eup %1749 }
 0x10b   : > { %907 = vadd.xlane.f32.xlu0 %v887_v24  ;;  %v521_v24 = vmax.f32 %v2274_v11, 1e-30 }
 0x10d   : > { %913 = vadd.xlane.f32.xlu1 %v890_v25  ;;  %v1625_v25 = vclamps-f32 %v2280_v17, 0.99999  ;;  %1767 = vrsqrt.f32 %v521_v24 }
 0x10f   : > { %915 = vadd.xlane.f32.xlu0 %v891_v26  ;;  %v2296_v26 = vmul.f32 %v2282_v18, %v418_v38  ;;  %v653_v36 = vsub.f32 1.0, %v1625_v25 }
 0x111   : > { %917 = vadd.xlane.f32.xlu1 %v892_v27  ;;  %v2298_v27 = vpop.xlane.xlu0 %456  ;;  %v1626_v37 = vclamps-f32 %v2296_v26, 0.99999 }
 0x112   : > { %v523_v34 = vmax.f32 %v2298_v27, 1e-30 }
 0x113   : > { %919 = vadd.xlane.f32.xlu0 %v893_v28  ;;  %v2300_v28 = vpop.eup %1751 }
 0x114   : > { %v2314_v38 = vmul.f32 %v2300_v28, %v427_v40  ;;  %v654_v40 = vsub.f32 1.0, %v1626_v37 }
 0x115   : > { %921 = vadd.xlane.f32.xlu1 %v894_v29  ;;  %v524_v29 = vmax.f32 %v2289_v22, 1e-30 }
 0x116   : > { %v1629_v52 = vclamps-f32 %v2314_v38, 0.99999 }
 0x117   : > { %923 = vadd.xlane.f32.xlu0 %v895_v30  ;;  %v2303_v30 = vpop.eup %1753  ;;  %1769 = vrsqrt.f32 %v524_v29 }
 0x118   : > { %v2317_v41 = vmul.f32 %v2303_v30, %v442_v47  ;;  %v657_v10 = vsub.f32 1.0, %v1629_v52 }
 0x119   : > { %925 = vadd.xlane.f32.xlu1 %v896_v31  ;;  %v655_v31 = vsub.f32 1.0, %v1627_v20 }
 0x11a   : > { %v1634_v54 = vclamps-f32 %v2317_v41, 0.99999 }
 0x11b   : > { %911 = vadd.xlane.f32.xlu0 %v889_v32  ;;  %v1628_v32 = vclamps-f32 %v2287_v21, 0.99999  ;;  %1771 = vrcp.f32 %v655_v31 }
 0x11c   : > { %1773 = vrsqrt.f32 %v523_v34  ;;  %v639_v34 = vadd.f32 1.0, %v1627_v20 }
 0x11d   : > { %929 = vadd.xlane.f32.xlu1 %v898_v33  ;;  %v2307_v33 = vmul.f32 %v2291_v23, %v430_v39  ;;  %v656_v39 = vsub.f32 1.0, %v1628_v32  ;;  %1775 = vrcp.f32 %v653_v36 }
 0x11f   : > { %927 = vadd.xlane.f32.xlu0 %v897_v35  ;;  %v2310_v35 = vpop.eup %1755  ;;  %v1630_v45 = vclamps-f32 %v2307_v33, 0.99999  ;;  %1777 = vrcp.f32 %v656_v39 }
 0x120   : > { %v2319_v43 = vpop.eup %1757  ;;  %v2324_v46 = vmul.f32 %v2310_v35, %v2251_v42  ;;  %1779 = vrcp.f32 %v654_v40  ;;  %v637_v40 = vadd.f32 1.0, %v1625_v25 }
 0x121   : > { %v2326_v48 = vpop.eup %1759  ;;  %v2331_v47 = vmul.f32 %v2319_v43, %v2253_v44  ;;  %v658_v62 = vsub.f32 1.0, %v1630_v45  ;;  %v662_v44 = vsub.f32 1.0, %v1634_v54 }
 0x122   : > { %v2334_v58 = vpop.eup %1761  ;;  %v3365_v42 = vclamps-f32 %v2324_v46, 0.99999  ;;  %v2339_v2 = vmul.f32 %v2326_v48, %v2255_v49 }
 0x123   : > { %v2341_v7 = vpop.eup %1763  ;;  %v3364_v15 = vclamps-f32 %v2331_v47, 0.99999  ;;  %v2346_v17 = vmul.f32 %v2334_v58, %v2257_v55  ;;  %1781 = vrcp.f32 %v658_v62 }
 0x124   : > { %v2348_v19 = vpop.eup %1765  ;;  %v660_v21 = vsub.f32 1.0, %v3365_v42  ;;  %v3362_v49 = vclamps-f32 %v2339_v2, 0.99999  ;;  %v2355_v24 = vmul.f32 %v2341_v7, %v2260_v59  ;;  %1783 = vrcp.f32 %v657_v10 }
 0x125   : > { %v2357_v26 = vpop.eup %1767  ;;  %v659_v29 = vsub.f32 1.0, %v3364_v15  ;;  %1785 = vrcp.f32 %v662_v44  ;;  %v3363_v55 = vclamps-f32 %v2346_v17, 0.99999  ;;  %v2364_v31 = vmul.f32 %v2348_v19, %v2266_v3 }
 0x126   : > { %v2366_v33 = vpop.eup %1769  ;;  %1787 = vrcp.f32 %v660_v21  ;;  %v661_v59 = vsub.f32 1.0, %v3362_v49  ;;  %v3366_v38 = vclamps-f32 %v2355_v24, 0.99999  ;;  %v2373_v41 = vmul.f32 %v2357_v26, %v2274_v11 }
 0x127   : > { %1789 = vrcp.f32 %v659_v29  ;;  %v664_v3 = vsub.f32 1.0, %v3363_v55  ;;  %v3367_v20 = vclamps-f32 %v2364_v31, 0.99999  ;;  %v2382_v10 = vmul.f32 %v2366_v33, %v2289_v22 }
 0x128   : > { %v1772_v36 = vpop.eup %1771  ;;  %v640_v21 = vadd.f32 1.0, %v1628_v32  ;;  %1791 = vrcp.f32 %v661_v59  ;;  %v663_v11 = vsub.f32 1.0, %v3366_v38  ;;  %v1637_v25 = vclamps-f32 %v2373_v41, 0.99999 }
 0x129   : > { %v2375_v39 = vpop.eup %1773  ;;  %v687_v44 = vmul.f32 %v1772_v36, %v639_v34  ;;  %v638_v15 = vadd.f32 1.0, %v1626_v37  ;;  %1793 = vrcp.f32 %v664_v3  ;;  %v666_v22 = vsub.f32 1.0, %v3367_v20 }
 0x12a   : > { %v1776_v62 = vpop.eup %1775  ;;  %v2389_v29 = vmul.f32 %v2375_v39, %v2298_v27  ;;  %v1640_v32 = vclamps-f32 %v2382_v10, 0.99999  ;;  %v642_v36 = vadd.f32 1.0, %v1630_v45  ;;  %v665_v38 = vsub.f32 1.0, %v1637_v25 }
 0x12b   : > { %v685_v55 = vmul.f32 %v1776_v62, %v637_v40  ;;  %1795 = vlog2.f32 %v687_v44  ;;  %v641_v37 = vadd.f32 1.0, %v1629_v52  ;;  %v646_v3 = vadd.f32 1.0, %v1634_v54 }
 0x12c   : > { %v1778_v49 = vpop.eup %1777  ;;  %1797 = vrcp.f32 %v663_v11  ;;  %v1639_v27 = vclamps-f32 %v2389_v29, 0.99999  ;;  %v668_v20 = vsub.f32 1.0, %v1640_v32  ;;  %v3412_v45 = vclamps-f32 %v2324_v46, 0.99999 }
 0x12d   : > { %v1780_v42 = vpop.eup %1779  ;;  %v688_v34 = vmul.f32 %v1778_v49, %v640_v21  ;;  %1799 = vlog2.f32 %v685_v55  ;;  %v3413_v52 = vclamps-f32 %v2331_v47, 0.99999  ;;  %v3415_v47 = vclamps-f32 %v2346_v17, 0.99999 }
 0x12e   : > { %v686_v40 = vmul.f32 %v1780_v42, %v638_v15  ;;  %1801 = vrcp.f32 %v666_v22  ;;  %v644_v44 = vadd.f32 1.0, %v3412_v45  ;;  %v667_v21 = vsub.f32 1.0, %v1639_v27 }
 0x12f   : > { %1803 = vlog2.f32 %v688_v34  ;;  %v643_v54 = vadd.f32 1.0, %v3413_v52  ;;  %v3414_v34 = vclamps-f32 %v2339_v2, 0.99999  ;;  %v3417_v52 = vclamps-f32 %v2364_v31, 0.99999 }
 0x130   : > { %v1782_v59 = vpop.eup %1781  ;;  %1805 = vrcp.f32 %v665_v38 }
 0x131   : > { %v1784_v62 = vpop.eup %1783  ;;  %v690_v49 = vmul.f32 %v1782_v59, %v642_v36  ;;  %1807 = vlog2.f32 %v686_v40  ;;  %v645_v36 = vadd.f32 1.0, %v3414_v34 }
 0x132   : > { %v1786_v16 = vpop.eup %1785  ;;  %v689_v42 = vmul.f32 %v1784_v62, %v641_v37  ;;  %1809 = vrcp.f32 %v668_v20  ;;  %v648_v37 = vadd.f32 1.0, %v3415_v47 }
 0x133   : > { %v1788_v11 = vpop.eup %1787  ;;  %v694_v15 = vmul.f32 %v1786_v16, %v646_v3  ;;  %1811 = vlog2.f32 %v690_v49  ;;  %v3416_v49 = vclamps-f32 %v2355_v24, 0.99999 }
 0x134   : > { %v1790_v55 = vpop.eup %1789  ;;  %v692_v22 = vmul.f32 %v1788_v11, %v644_v44  ;;  %1813 = vrcp.f32 %v667_v21 }
 0x135   : > { %v1792_v38 = vpop.eup %1791  ;;  %1815 = vlog2.f32 %v689_v42  ;;  %v691_v40 = vmul.f32 %v1790_v55, %v643_v54  ;;  %v647_v45 = vadd.f32 1.0, %v3416_v49  ;;  %v650_v54 = vadd.f32 1.0, %v3417_v52 }
 0x136   : > { %1817 = vlog2.f32 %v694_v15  ;;  %v1794_v20 = vpop.eup %1793  ;;  %v693_v3 = vmul.f32 %v1792_v38, %v645_v36  ;;  %v649_v36 = vadd.f32 1.0, %v1637_v25  ;;  %v651_v49 = vadd.f32 1.0, %v1639_v27 }
 0x137   : > { %v696_v42 = vmul.f32 %v1794_v20, %v648_v37  ;;  %v652_v37 = vadd.f32 1.0, %v1640_v32 }
 0x138   : > { %v2415_v2 = vpop.eup %1795 }
 0x139   : > { %v1798_v21 = vpop.eup %1797 }
 0x13a   : > { %v1800_v11 = vpop.eup %1799  ;;  %v695_v34 = vmul.f32 %v1798_v21, %v647_v45 }
 0x13b   : > { %v1802_v55 = vpop.eup %1801  ;;  %v702_v27 = vmul.f32 0.6931472, %v1800_v11 }
 0x13c   : > { %v1804_v24 = vpop.eup %1803  ;;  %v698_v47 = vmul.f32 %v1802_v55, %v650_v54 }
 0x13d   : > { %v708_v12 = vmul.f32 0.6931472, %v1804_v24 }
 0x13f   : > { %v736_v61 = vmul.f32 0.5, %v708_v12 }
 0x16a   : > { %v2407_v46 = vpop.xlane.xlu1 %479 }
 0x16b   : > { %v542_v59 = vmax.f32 %v2407_v46, 1e-30  ;;  %vm798_vm1 = vcmp.eq.f32.partialorder %v2407_v46, 0.0 }
 0x16c   : > { %v2412_v16 = vpop.xlane.xlu0 %477 }
 0x16d   : > { %1819 = vrsqrt.f32 %v542_v59  ;;  %v541_v62 = vmax.f32 %v2412_v16, 1e-30  ;;  %v1806_v59 = vpop.eup %1805  ;;  %vm797_vm2 = vcmp.eq.f32.partialorder %v2412_v16, 0.0 }
 0x16e   : > { %1821 = vlog2.f32 %v692_v22  ;;  %v2419_v44 = vpop.xlane.xlu1 %495  ;;  %v1808_v31 = vpop.eup %1807  ;;  %v697_v25 = vmul.f32 %v1806_v59, %v649_v36 }
 0x16f   : > { %1823 = vrsqrt.f32 %v541_v62  ;;  %v550_v17 = vmax.f32 %v2419_v44, 1e-30  ;;  %v1810_v62 = vpop.eup %1809  ;;  %vm806_vm14 = vcmp.eq.f32.partialorder %v2419_v44, 0.0 }
 0x170   : > { %1825 = vlog2.f32 %v691_v40  ;;  %v2424_v15 = vpop.xlane.xlu0 %493  ;;  %v2437_v41 = vpop.eup %1811 }
 0x171   : > { %1827 = vrsqrt.f32 %v550_v17  ;;  %v549_v22 = vmax.f32 %v2424_v15, 1e-30  ;;  %v1814_v21 = vpop.eup %1813  ;;  %v700_v17 = vmul.f32 %v1810_v62, %v652_v37  ;;  %v712_v56 = vmul.f32 0.6931472, %v2437_v41 }
 0x172   : > { %1829 = vlog2.f32 %v693_v3  ;;  %v2429_v38 = vpop.xlane.xlu1 %483  ;;  %v2444_v32 = vpop.eup %1815  ;;  %v699_v29 = vmul.f32 %v1814_v21, %v651_v49  ;;  %vm805_vm9 = vcmp.eq.f32.partialorder %v2424_v15, 0.0 }
 0x173   : > { %1831 = vrsqrt.f32 %v549_v22  ;;  %v544_v40 = vmax.f32 %v2429_v38, 1e-30  ;;  %v1818_v54 = vpop.eup %1817  ;;  %vm800_vm3 = vcmp.eq.f32.partialorder %v2429_v38, 0.0 }
 0x174   : > { %1833 = vlog2.f32 %v696_v42  ;;  %v2434_v20 = vpop.xlane.xlu0 %481  ;;  %v704_v42 = vmul.f32 0.6931472, %v1808_v31  ;;  %v720_v37 = vmul.f32 0.6931472, %v1818_v54 }
 0x175   : > { %1835 = vrsqrt.f32 %v544_v40  ;;  %v543_v3 = vmax.f32 %v2434_v20, 1e-30  ;;  %vm799_vm4 = vcmp.eq.f32.partialorder %v2434_v20, 0.0 }
 0x176   : > { %1837 = vlog2.f32 %v695_v34  ;;  %v2441_v45 = vpop.xlane.xlu1 %499 }
 0x177   : > { %3418 = vst [vmem:[#allocation19_spill] sm:$0xff] %v2441_v45  ;;  %1839 = vrsqrt.f32 %v543_v3  ;;  %v552_v10 = vmax.f32 %v2441_v45, 1e-30 }
 0x178   : > { %1841 = vlog2.f32 %v698_v47  ;;  %v2446_v52 = vpop.xlane.xlu0 %497  ;;  %v734_v47 = vmul.f32 0.5, %v704_v42 }
 0x179   : > { %1843 = vrsqrt.f32 %v552_v10  ;;  %v551_v55 = vmax.f32 %v2446_v52, 1e-30  ;;  %v733_v10 = vmul.f32 0.5, %v702_v27  ;;  %vm807_vm0 = vcmp.eq.f32.partialorder %v2446_v52, 0.0 }
 0x17a   : > { %v2449_v22 = vpop.eup %1819  ;;  %1845 = vlog2.f32 %v697_v25  ;;  %v2451_v34 = vpop.xlane.xlu1 %487 }
 0x17b   : > { %v2453_v36 = vpop.eup %1821  ;;  %v590_v59 = vmul.f32 %v2449_v22, %v2407_v46  ;;  %1847 = vrsqrt.f32 %v551_v55  ;;  %v546_v40 = vmax.f32 %v2451_v34, 1e-30  ;;  %vm802_vm5 = vcmp.eq.f32.partialorder %v2451_v34, 0.0 }
 0x17c   : > { %v2458_v31 = vpop.eup %1823  ;;  %1849 = vlog2.f32 %v700_v17  ;;  %v2460_v62 = vpop.xlane.xlu0 %485  ;;  %v706_v17 = vmul.f32 0.6931472, %v2415_v2 }
 0x17d   : > { %v2462_v3 = vpop.eup %1825  ;;  %v750_v11 = vmul.f32 %v2282_v18, %v590_v59  ;;  %v589_v25 = vmul.f32 %v2458_v31, %v2412_v16  ;;  %1851 = vrsqrt.f32 %v546_v40  ;;  %v545_v49 = vmax.f32 %v2460_v62, 1e-30 }
 0x17e   : > { %v2468_v21 = vpop.eup %1827  ;;  %1853 = vlog2.f32 %v699_v29  ;;  %v2471_v42 = vpop.xlane.xlu1 %503  ;;  %v742_v40 = vmul.f32 0.5, %v720_v37  ;;  %vm801_vm6 = vcmp.eq.f32.partialorder %v2460_v62, 0.0 }
 0x17f   : > { %3419 = vst [vmem:[#allocation20_spill] sm:$0xff] %v2471_v42  ;;  %v1830_v54 = vpop.eup %1829  ;;  %v766_v55 = vmul.f32 %v750_v11, %v734_v47  ;;  %v749_v13 = vmul.f32 %v2268_v6, %v589_v25  ;;  %v598_v18 = vmul.f32 %v2468_v21, %v2419_v44  ;;  %1855 = vrsqrt.f32 %v545_v49 }
 0x180   : > { %v2476_v59 = vpop.eup %1831  ;;  %v554_v5 = vmax.f32 %v2471_v42, 1e-30  ;;  %v2479_v29 = vpop.xlane.xlu0 %501  ;;  %v718_v11 = vmul.f32 0.6931472, %v1830_v54 }
 0x181   : > { %v1834_v27 = vpop.eup %1833  ;;  %1857 = vtanh.f32 %v766_v55  ;;  %v765_v2 = vmul.f32 %v749_v13, %v733_v10  ;;  %v758_v8 = vmul.f32 %v2303_v30, %v598_v18  ;;  %v597_v6 = vmul.f32 %v2476_v59, %v2424_v15 }
 0x182   : > { %v2484_v47 = vpop.eup %1835  ;;  %1859 = vrsqrt.f32 %v554_v5  ;;  %v553_v25 = vmax.f32 %v2479_v29, 1e-30  ;;  %v2487_v37 = vpop.xlane.xlu1 %491  ;;  %v735_v55 = vmul.f32 0.5, %v706_v17  ;;  %v741_v51 = vmul.f32 0.5, %v718_v11 }
 0x183   : > { %v1838_v24 = vpop.eup %1837  ;;  %1861 = vtanh.f32 %v765_v2  ;;  %v2489_v49 = vmul.f32 %v758_v8, %v742_v40  ;;  %v592_v13 = vmul.f32 %v2484_v47, %v2429_v38  ;;  %v757_v30 = vmul.f32 %v2326_v48, %v597_v6 }
 0x184   : > { %v2493_v10 = vpop.eup %1839  ;;  %1863 = vrsqrt.f32 %v553_v25  ;;  %v548_v54 = vmax.f32 %v2487_v37, 1e-30  ;;  %v2497_v5 = vpop.xlane.xlu0 %489  ;;  %v724_v40 = vmul.f32 0.6931472, %v1834_v27  ;;  %v722_v25 = vmul.f32 0.6931472, %v1838_v24 }
 0x185   : > { %3420 = vst [vmem:[#allocation21_spill] sm:$0xff] %v2497_v5  ;;  %v1842_v18 = vpop.eup %1841  ;;  %v752_v0 = vmul.f32 %v2276_v14, %v592_v13  ;;  %v591_v8 = vmul.f32 %v2493_v10, %v2434_v20  ;;  %v547_v48 = vmax.f32 %v2497_v5, 1e-30  ;;  %v710_v14 = vmul.f32 0.6931472, %v2444_v32 }
 0x186   : > { %v2502_v2 = vpop.eup %1843  ;;  %1865 = vrsqrt.f32 %v548_v54  ;;  %v2506_v17 = vpop.xlane.xlu1 %507  ;;  %v716_v13 = vmul.f32 0.6931472, %v2453_v36  ;;  %v773_v9 = vmul.f32 %v757_v30, %v741_v51  ;;  %v744_v60 = vmul.f32 0.5, %v724_v40 }
 0x187   : > { %3421 = vst [vmem:[#allocation22_spill] sm:$0xff] %v2502_v2  ;;  %3422 = vst [vmem:[#allocation23_spill] sm:$0xff] %v2506_v17  ;;  %v1846_v6 = vpop.eup %1845  ;;  %v600_v12 = vmul.f32 %v2502_v2, %v2441_v45  ;;  %v751_v11 = vmul.f32 %v2263_v63, %v591_v8  ;;  %1867 = vrsqrt.f32 %v547_v48  ;;  %v556_v41 = vmax.f32 %v2506_v17, 1e-30 }
 0x188   : > { %v2512_v27 = vpop.eup %1847  ;;  %v2516_v54 = vpop.xlane.xlu0 %505  ;;  %v768_v1 = vmul.f32 %v752_v0, %v736_v61  ;;  %v728_v36 = vmul.f32 0.6931472, %v1842_v18  ;;  %v726_v45 = vmul.f32 0.6931472, %v1846_v6  ;;  %v743_v8 = vmul.f32 0.5, %v722_v25 }
 0x189   : > { %3423 = vst [vmem:[#allocation24_spill] sm:$0xff] %v2516_v54  ;;  %v1850_v4 = vpop.eup %1849  ;;  %v760_v2 = vmul.f32 %v2334_v58, %v600_v12  ;;  %v599_v32 = vmul.f32 %v2512_v27, %v2446_v52  ;;  %1869 = vrsqrt.f32 %v556_v41  ;;  %v555_v51 = vmax.f32 %v2516_v54, 1e-30 }
 0x18a   : > { %v2521_v24 = vpop.eup %1851  ;;  %1871 = vtanh.f32 %v773_v9  ;;  %v767_v0 = vmul.f32 %v751_v11, %v735_v55  ;;  %v738_v58 = vmul.f32 0.5, %v712_v56  ;;  %v737_v40 = vmul.f32 0.5, %v710_v14 }
 0x18b   : > { %v1854_v63 = vpop.eup %1853  ;;  %v776_v30 = vmul.f32 %v760_v2, %v744_v60  ;;  %v759_v48 = vmul.f32 %v2341_v7, %v599_v32  ;;  %1873 = vtanh.f32 %v768_v1  ;;  %v594_v18 = vmul.f32 %v2521_v24, %v2451_v34 }
 0x18c   : > { %v2527_v61 = vpop.eup %1855  ;;  %v714_v6 = vmul.f32 0.6931472, %v2462_v3  ;;  %v746_v60 = vmul.f32 0.5, %v728_v36  ;;  %v745_v2 = vmul.f32 0.5, %v726_v45  ;;  %v2532_v25 = vmul.f32 0.5, %v716_v13  ;;  %v902_v36 = vpop.xlane.xlu1 %901 }
 0x18d   : > { %v775_v12 = vmul.f32 %v759_v48, %v743_v8  ;;  %1875 = vrsqrt.f32 %v555_v51  ;;  %v593_v9 = vmul.f32 %v2527_v61, %v2460_v62  ;;  %v732_v56 = vmul.f32 0.6931472, %v1850_v4 }
 0x18e   : > { %v1858_v41 = vpop.eup %1857  ;;  %v730_v55 = vmul.f32 0.6931472, %v1854_v63  ;;  %1877 = vtanh.f32 %v767_v0  ;;  %v754_v11 = vmul.f32 %v2291_v23, %v594_v18  ;;  %v2561_v48 = vstv %s2525_s13 }
 0x18f   : > { %v2534_v7 = vpop.eup %1859  ;;  %v814_v1 = vmul.f32 %v1858_v41, %v2449_v22  ;;  %v846_v45 = vmul.f32 %v1858_v41, %v1858_v41  ;;  %v753_v23 = vmul.f32 %v2300_v28, %v593_v9  ;;  %v739_v9 = vmul.f32 0.5, %v714_v6 }
 0x190   : > { %3424 = vst [vmem:[#allocation25_spill] sm:$0xff] %v2534_v7  ;;  %v1862_v14 = vpop.eup %1861  ;;  %v602_v3 = vmul.f32 %v2534_v7, %v2471_v42  ;;  %v770_v28 = vmul.f32 %v754_v11, %v738_v58  ;;  %1879 = vtanh.f32 %v2489_v49  ;;  %vm804_vm7 = vcmp.eq.f32.partialorder %v2487_v37, 0.0 }
 0x191   : > { %v2542_v13 = vpop.eup %1863  ;;  %v2545_v32 = vsel %vm798_vm1, 0.0, %v814_v1  ;;  %v813_v4 = vmul.f32 %v1862_v14, %v2458_v31  ;;  %v2552_v63 = vsel %vm798_vm1, 0.0, %v846_v45  ;;  %1881 = vtanh.f32 %v776_v30 }
 0x192   : > { %v762_v22 = vmul.f32 %v2348_v19, %v602_v3  ;;  %v601_v51 = vmul.f32 %v2542_v13, %v2479_v29  ;;  %v2555_v46 = vmul.f32 %v902_v36, %v2545_v32  ;;  %v2564_v0 = vsub.f32 1.0, %v2552_v63  ;;  %v900_v3 = vpop.xlane.xlu0 %899 }
 0x193   : > { %v2557_v8 = vpop.eup %1865  ;;  %v2568_v19 = vsel %vm797_vm2, 0.0, %v813_v4  ;;  %v748_v36 = vmul.f32 0.5, %v732_v56  ;;  %v2581_v4 = vmul.f32 0.5, %v730_v55  ;;  %v1013_v58 = vmul.f32 %v2561_v48, %v2552_v63 }
 0x194   : > { %v778_v31 = vmul.f32 %v762_v22, %v746_v60  ;;  %v761_v18 = vmul.f32 %v2357_v26, %v601_v51  ;;  %v596_v41 = vmul.f32 %v2557_v8, %v2487_v37  ;;  %v948_v1 = vmul.f32 2.0, %v2555_v46  ;;  %v2574_v45 = vpop.eup %1867 }
 0x195   : > { %3425 = vst [vmem:[#allocation26_spill] sm:$0xff] %v2574_v45  ;;  %v2577_v7 = vmul.f32 %v900_v3, %v2568_v19  ;;  %v595_v60 = vmul.f32 %v2574_v45, %v2497_v5  ;;  %v845_v26 = vmul.f32 %v1862_v14, %v1862_v14  ;;  %v769_v51 = vmul.f32 %v753_v23, %v737_v40 }
 0x196   : > { %v777_v42 = vmul.f32 %v761_v18, %v745_v2  ;;  %v2583_v22 = vpop.eup %1869  ;;  %v964_v6 = vadd.f32 1.0, %v948_v1  ;;  %v756_v2 = vmul.f32 %v2310_v35, %v596_v41  ;;  %v1173_v55 = vmul.f32 %v2564_v0, %v2564_v0 }
 0x197   : > { %3426 = vst [vmem:[#allocation27_spill] sm:$0xff] %v2583_v22  ;;  %v755_v56 = vmul.f32 %v2319_v43, %v595_v60  ;;  %v2593_v14 = vpop.eup %1871  ;;  %1883 = vtanh.f32 %v770_v28  ;;  %v947_v11 = vmul.f32 2.0, %v2577_v7  ;;  %v604_v30 = vmul.f32 %v2583_v22, %v2506_v17 }
 0x198   : > { %v981_v49 = vadd.f32 %v2561_v48, %v964_v6  ;;  %v1029_v40 = vadd.f32 %v1013_v58, %v964_v6  ;;  %v1874_v23 = vpop.eup %1873  ;;  %1885 = vtanh.f32 %v775_v12  ;;  %v2601_v35 = vsel %vm797_vm2, 0.0, %v845_v26 }
 0x199   : > { %v771_v18 = vmul.f32 %v755_v56, %v739_v9  ;;  %1887 = vtanh.f32 %v769_v51  ;;  %v772_v3 = vmul.f32 %v756_v2, %v2532_v25  ;;  %v1189_v12 = vmul.f32 %v1173_v55, %v2561_v48 }
 0x19a   : > { %v2603_v43 = vpop.eup %1875  ;;  %v1045_v41 = vadd.f32 1e-05, %v1029_v40  ;;  %v1109_v1 = vmul.f32 2.0, %v981_v49  ;;  %1889 = vtanh.f32 %v778_v31  ;;  %v2610_v28 = vmul.f32 %v2593_v14, %v2476_v59 }
 0x19b   : > { %3427 = vst [vmem:[#allocation28_spill] sm:$0xff] %v2603_v43  ;;  %v1878_v9 = vpop.eup %1877  ;;  %v1012_v60 = vmul.f32 %v2561_v48, %v2601_v35  ;;  %v963_v26 = vadd.f32 1.0, %v947_v11  ;;  %v764_v51 = vmul.f32 %v2366_v33, %v604_v30  ;;  %v603_v25 = vmul.f32 %v2603_v43, %v2516_v54  ;;  %v906_v30 = vpop.xlane.xlu1 %905 }
 0x19c   : > { %1891 = vrcp.f32 %v1045_v41  ;;  %v1125_v16 = vmul.f32 %v1109_v1, %v2564_v0  ;;  %v816_v31 = vmul.f32 %v1874_v23, %v2484_v47  ;;  %v1077_v58 = vmul.f32 %v981_v49, %v981_v49 }
 0x19d   : > { %1893 = vtanh.f32 %v777_v42  ;;  %v2620_v59 = vadd.f32 %v2561_v48, %v963_v26  ;;  %v1028_v6 = vadd.f32 %v1012_v60, %v963_v26  ;;  %v848_v2 = vmul.f32 %v1874_v23, %v1874_v23  ;;  %v904_v26 = vpop.xlane.xlu0 %903 }
 0x19e   : > { %v2623_v56 = vsub.f32 1.0, %v2601_v35  ;;  %v2627_v55 = vsel %vm800_vm3, 0.0, %v816_v31  ;;  %v815_v33 = vmul.f32 %v1878_v9, %v2493_v10  ;;  %v847_v42 = vmul.f32 %v1878_v9, %v1878_v9  ;;  %v2646_v9 = vpop.eup %1879 }
 0x19f   : > { %1895 = vtanh.f32 %v772_v3  ;;  %v1141_v40 = vmul.f32 %v1125_v16, %v2555_v46  ;;  %v1044_v47 = vadd.f32 1e-05, %v1028_v6  ;;  %v1108_v11 = vmul.f32 2.0, %v2620_v59  ;;  %v2658_v38 = vpop.eup %1881 }
 0x1a0   : > { %v780_v41 = vmul.f32 %v764_v51, %v748_v36  ;;  %v763_v23 = vmul.f32 %v2375_v39, %v603_v25  ;;  %v2634_v1 = vmul.f32 %v906_v30, %v2627_v55  ;;  %v2638_v60 = vsel %vm799_vm4, 0.0, %v815_v33 }
 0x1a1   : > { %v1093_v10 = vmul.f32 %v1077_v58, %v2552_v63  ;;  %1897 = vrcp.f32 %v1044_v47  ;;  %v1124_v3 = vmul.f32 %v1108_v11, %v2623_v56  ;;  %v2644_v46 = vsel %vm800_vm3, 0.0, %v848_v2 }
 0x1a2   : > { %v1172_v39 = vmul.f32 %v2623_v56, %v2623_v56  ;;  %v1076_v36 = vmul.f32 %v2620_v59, %v2620_v59  ;;  %v950_v16 = vmul.f32 2.0, %v2634_v1  ;;  %v2655_v63 = vsel %vm799_vm4, 0.0, %v847_v42 }
 0x1a3   : > { %1899 = vtanh.f32 %v771_v18  ;;  %v1157_v51 = vadd.f32 %v1141_v40, %v1093_v10  ;;  %v1333_v25 = vmul.f32 %v981_v49, %v2545_v32  ;;  %v2662_v31 = vmul.f32 %v904_v26, %v2638_v60 }
 0x1a4   : > { %v1884_v58 = vpop.eup %1883  ;;  %v1140_v6 = vmul.f32 %v1124_v3, %v2577_v7  ;;  %v2666_v2 = vsub.f32 1.0, %v2644_v46  ;;  %v1015_v20 = vmul.f32 %v2561_v48, %v2644_v46  ;;  %v966_v33 = vadd.f32 1.0, %v950_v16 }
 0x1a5   : > { %v2670_v42 = vpop.eup %1885  ;;  %1901 = vtanh.f32 %v780_v41  ;;  %v2673_v18 = vmul.f32 %v763_v23, %v2581_v4  ;;  %v2676_v32 = vsub.f32 1.0, %v2655_v63  ;;  %v949_v49 = vmul.f32 2.0, %v2662_v31 }
 0x1a6   : > { %v1888_v40 = vpop.eup %1887  ;;  %v1188_v7 = vmul.f32 %v1172_v39, %v2561_v48  ;;  %v1092_v47 = vmul.f32 %v1076_v36, %v2601_v35  ;;  %v983_v11 = vadd.f32 %v2561_v48, %v966_v33  ;;  %v1031_v30 = vadd.f32 %v1015_v20, %v966_v33 }
 0x1a7   : > { %3428 = vst [vmem:[#allocation29_spill] sm:$0xff] %v2673_v18  ;;  %v2682_v10 = vpop.eup %1889  ;;  %v1205_v3 = vadd.f32 %v1189_v12, %v1157_v51  ;;  %v1014_v4 = vmul.f32 %v2561_v48, %v2655_v63  ;;  %v965_v41 = vadd.f32 1.0, %v949_v49  ;;  %v818_v23 = vmul.f32 %v1884_v58, %v2521_v24 }
 0x1a8   : > { %v1156_v26 = vadd.f32 %v1140_v6, %v1092_v47  ;;  %v1175_v54 = vmul.f32 %v2666_v2, %v2666_v2  ;;  %v1047_v39 = vadd.f32 1e-05, %v1031_v30  ;;  %v1111_v43 = vmul.f32 2.0, %v983_v11 }
 0x1a9   : > { %v1892_v16 = vpop.eup %1891  ;;  %v1174_v12 = vmul.f32 %v2676_v32, %v2676_v32  ;;  %v982_v51 = vadd.f32 %v2561_v48, %v965_v41  ;;  %v850_v20 = vmul.f32 %v1884_v58, %v1884_v58  ;;  %v1332_v24 = vmul.f32 %v2620_v59, %v2568_v19 }
 0x1aa   : > { %v2690_v35 = vpop.eup %1893  ;;  %v1221_v36 = vmul.f32 %v1892_v16, %v1892_v16  ;;  %1903 = vrcp.f32 %v1047_v39  ;;  %v1030_v6 = vadd.f32 %v1014_v4, %v965_v41  ;;  %v817_v33 = vmul.f32 %v1888_v40, %v2527_v61 }
 0x1ab   : > { %v1127_v47 = vmul.f32 %v1111_v43, %v2666_v2  ;;  %v1110_v30 = vmul.f32 2.0, %v982_v51  ;;  %v2703_v22 = vsel %vm802_vm5, 0.0, %v818_v23  ;;  %v1204_v18 = vadd.f32 %v1188_v7, %v1156_v26 }
 0x1ac   : > { %v2698_v49 = vmul.f32 %v1221_v36, %v1205_v3  ;;  %v1896_v17 = vpop.eup %1895  ;;  %v1191_v58 = vmul.f32 %v1175_v54, %v2561_v48  ;;  %v1079_v45 = vmul.f32 %v983_v11, %v983_v11  ;;  %v1046_v5 = vadd.f32 1e-05, %v1030_v6  ;;  %v910_v3 = vpop.xlane.xlu1 %909 }
 0x1ad   : > { %v1190_v59 = vmul.f32 %v1174_v12, %v2561_v48  ;;  %v1126_v61 = vmul.f32 %v1110_v30, %v2676_v32  ;;  %v2711_v43 = vsel %vm802_vm5, 0.0, %v850_v20  ;;  %v2714_v41 = vmul.f32 %v983_v11, %v2627_v55  ;;  %v908_v6 = vpop.xlane.xlu0 %907 }
 0x1ae   : > { %v1253_v19 = vmax.f32 %v2698_v49, 1e-10  ;;  %v1898_v4 = vpop.eup %1897  ;;  %1905 = vrcp.f32 %v1046_v5  ;;  %v1078_v7 = vmul.f32 %v982_v51, %v982_v51  ;;  %v2717_v54 = vmul.f32 %v910_v3, %v2703_v22 }
 0x1af   : > { %v2720_v23 = vmul.f32 %v1892_v16, %v1333_v25  ;;  %v1220_v26 = vmul.f32 %v1898_v4, %v1898_v4  ;;  %v1143_v34 = vmul.f32 %v1127_v47, %v2634_v1  ;;  %v2726_v36 = vmul.f32 %v1892_v16, %v2564_v0 }
 0x1b0   : > { %1907 = vrsqrt.f32 %v1253_v19  ;;  %v2723_v39 = vpop.eup %1899  ;;  %v1095_v55 = vmul.f32 %v1079_v45, %v2644_v46  ;;  %v2730_v5 = vsub.f32 1.0, %v2711_v43  ;;  %v952_v11 = vmul.f32 2.0, %v2717_v54 }
 0x1b1   : > { %v2733_v12 = vmul.f32 %v1220_v26, %v1204_v18  ;;  %v1142_v25 = vmul.f32 %v1126_v61, %v2662_v31  ;;  %v2738_v20 = vsel %vm801_vm6, 0.0, %v817_v33  ;;  %v849_v1 = vmul.f32 %v1888_v40, %v1888_v40 }
 0x1b2   : > { %v2740_v47 = vpop.eup %1901  ;;  %v1094_v0 = vmul.f32 %v1078_v7, %v2655_v63  ;;  %v1017_v45 = vmul.f32 %v2561_v48, %v2711_v43  ;;  %v968_v46 = vadd.f32 1.0, %v952_v11  ;;  %v2746_v16 = vmul.f32 %v908_v6, %v2738_v20 }
 0x1b3   : > { %3429 = vst [vmem:[#allocation30_spill] sm:$0xff] %v2740_v47  ;;  %v1252_v18 = vmax.f32 %v2733_v12, 1e-10  ;;  %v1159_v31 = vadd.f32 %v1143_v34, %v1095_v55  ;;  %v2751_v33 = vsel %vm801_vm6, 0.0, %v849_v1  ;;  %v852_v40 = vmul.f32 %v1896_v17, %v1896_v17 }
 0x1b4   : > { %v1334_v30 = vmul.f32 %v982_v51, %v2638_v60  ;;  %v1177_v63 = vmul.f32 %v2730_v5, %v2730_v5  ;;  %v985_v19 = vadd.f32 %v2561_v48, %v968_v46  ;;  %v1033_v61 = vadd.f32 %v1017_v45, %v968_v46 }
 0x1b5   : > { %1909 = vrsqrt.f32 %v1252_v18  ;;  %v1158_v3 = vadd.f32 %v1142_v25, %v1094_v0  ;;  %v951_v7 = vmul.f32 2.0, %v2746_v16  ;;  %v820_v26 = vmul.f32 %v1896_v17, %v2557_v8 }
 0x1b6   : > { %vm1285_vm8 = vcmp.gt.f32.partialorder %v2698_v49, 0.99800104  ;;  %v2760_v62 = vmul.f32 %v1898_v4, %v1332_v24  ;;  %v2763_v34 = vmul.f32 %v1898_v4, %v2623_v56  ;;  %v1049_v60 = vadd.f32 1e-05, %v1033_v61 }
 0x1b7   : > { %v2766_v51 = vsub.f32 1.0, %v2751_v33  ;;  %v1904_v55 = vpop.eup %1903  ;;  %v1207_v11 = vadd.f32 %v1191_v58, %v1159_v31  ;;  %v1113_v1 = vmul.f32 2.0, %v985_v19  ;;  %v967_v6 = vadd.f32 1.0, %v951_v7 }
 0x1b8   : > { %v2770_v25 = vsel %vm804_vm7, 0.0, %v852_v40  ;;  %v1223_v17 = vmul.f32 %v1904_v55, %v1904_v55  ;;  %v2773_v8 = vmul.f32 %v1177_v63, %v2561_v48  ;;  %1911 = vrcp.f32 %v1049_v60 }
 0x1b9   : > { %v1016_v56 = vmul.f32 %v2561_v48, %v2751_v33  ;;  %v1206_v24 = vadd.f32 %v1190_v59, %v1158_v3  ;;  %v1081_v4 = vmul.f32 %v985_v19, %v985_v19  ;;  %v984_v58 = vadd.f32 %v2561_v48, %v967_v6 }
 0x1ba   : > { %v2781_v0 = vsel %vm804_vm7, 0.0, %v820_v26  ;;  %v2783_v45 = vmul.f32 %v1223_v17, %v1207_v11  ;;  %v1176_v46 = vmul.f32 %v2766_v51, %v2766_v51  ;;  %v2788_v31 = vsub.f32 1.0, %v2770_v25 }
 0x1bb   : > { %v1032_v18 = vadd.f32 %v1016_v56, %v967_v6  ;;  %v1906_v40 = vpop.eup %1905  ;;  %v1129_v63 = vmul.f32 %v1113_v1, %v2730_v5  ;;  %v2792_v59 = vmul.f32 %v985_v19, %v2703_v22  ;;  %v1112_v61 = vmul.f32 2.0, %v984_v58  ;;  %v914_v1 = vpop.xlane.xlu1 %913 }
 0x1bc   : > { %v1019_v37 = vmul.f32 %v2561_v48, %v2770_v25  ;;  %vm1284_vm10 = vcmp.gt.f32.partialorder %v2733_v12, 0.99800104  ;;  %v1255_v7 = vmax.f32 %v2783_v45, 1e-10  ;;  %v2799_v26 = vmul.f32 %v1904_v55, %v2714_v41 }
 0x1bd   : > { %v1908_v3 = vpop.eup %1907  ;;  %v2802_v60 = vmul.f32 %v1904_v55, %v2666_v2  ;;  %v1222_v11 = vmul.f32 %v1906_v40, %v1906_v40  ;;  %v1097_v19 = vmul.f32 %v1081_v4, %v2711_v43  ;;  %v1048_v6 = vadd.f32 1e-05, %v1032_v18  ;;  %v916_v4 = vpop.xlane.xlu0 %915 }
 0x1be   : > { %v1301_v22 = vmul.f32 0.999, %v1908_v3  ;;  %v2806_v17 = vmul.f32 %v914_v1, %v2781_v0  ;;  %1913 = vrsqrt.f32 %v1255_v7  ;;  %v2811_v47 = vmul.f32 %v1176_v46, %v2561_v48 }
 0x1bf   : > { %v2808_v56 = vmul.f32 %v1222_v11, %v1206_v24  ;;  %v1179_v2 = vmul.f32 %v2788_v31, %v2788_v31  ;;  %v1145_v55 = vmul.f32 %v1129_v63, %v2717_v54  ;;  %1915 = vrcp.f32 %v1048_v6 }
 0x1c0   : > { %v1317_v41 = vsel %vm1285_vm8, %v1301_v22, 1.0  ;;  %v1128_v43 = vmul.f32 %v1112_v61, %v2766_v51  ;;  %v1080_v3 = vmul.f32 %v984_v58, %v984_v58  ;;  %v2823_v7 = vmul.f32 %v1906_v40, %v1334_v30 }
 0x1c1   : > { %v1365_v24 = vmul.f32 %v2720_v23, %v1317_v41  ;;  %v1397_v18 = vmul.f32 %v2726_v36, %v1317_v41  ;;  %v1254_v46 = vmax.f32 %v2808_v56, 1e-10  ;;  %v2826_v49 = vmul.f32 %v984_v58, %v2738_v20  ;;  %v2838_v36 = vld [vmem:[%s3359_s2] ss:$0 sm:$0xff] }
 0x1c2   : > { %v954_v54 = vmul.f32 2.0, %v2806_v17  ;;  %v2832_v63 = vsel %vm805_vm9, 0.0, %v2610_v28  ;;  %v1910_v61 = vpop.eup %1909  ;;  %v1161_v11 = vadd.f32 %v1145_v55, %v1097_v19  ;;  %v1144_v28 = vmul.f32 %v1128_v43, %v2746_v16 }
 0x1c3   : > { %v1413_v23 = vmul.f32 %v2168_v50, %v1365_v24  ;;  %v1429_v30 = vmul.f32 %v2838_v36, %v1397_v18  ;;  %1917 = vrsqrt.f32 %v1254_v46  ;;  %v2842_v20 = vmul.f32 %v916_v4, %v2832_v63 }
 0x1c4   : > { %v1300_v58 = vmul.f32 0.999, %v1910_v61  ;;  %v970_v1 = vadd.f32 1.0, %v954_v54  ;;  %v2848_v50 = vmul.f32 %v1906_v40, %v2676_v32  ;;  %v1096_v6 = vmul.f32 %v1080_v3, %v2751_v33 }
 0x1c5   : > { %v1445_v22 = vadd.f32 %v1429_v30, %v1413_v23  ;;  %v853_v41 = vmul.f32 %v2593_v14, %v2593_v14  ;;  %v1912_v24 = vpop.eup %1911  ;;  %vm1287_vm11 = vcmp.gt.f32.partialorder %v2783_v45, 0.99800104  ;;  %v955_v16 = vmul.f32 2.0, %v2842_v20 }
 0x1c6   : > { %v1316_v4 = vsel %vm1284_vm10, %v1300_v58, 1.0  ;;  %v987_v19 = vadd.f32 %v2561_v48, %v970_v1  ;;  %v1035_v55 = vadd.f32 %v1019_v37, %v970_v1  ;;  %v1209_v40 = vadd.f32 %v2773_v8, %v1161_v11 }
 0x1c7   : > { %vm1461_vm12 = vcmp.ge.f32.partialorder %v1445_v22, 0.0  ;;  %v1477_v43 = vmul.f32 0.2, %v1445_v22  ;;  %v1364_v32 = vmul.f32 %v2760_v62, %v1316_v4  ;;  %v1396_v33 = vmul.f32 %v2763_v34, %v1316_v4 }
 0x1c8   : > { %v1225_v14 = vmul.f32 %v1912_v24, %v1912_v24  ;;  %v1160_v18 = vadd.f32 %v1144_v28, %v1096_v6  ;;  %v1051_v46 = vadd.f32 1e-05, %v1035_v55  ;;  %v2865_v37 = vsel %vm805_vm9, 0.0, %v853_v41 }
 0x1c9   : > { %v1493_v12 = vsel %vm1461_vm12, %v1445_v22, %v1477_v43  ;;  %v1412_v3 = vmul.f32 %v1364_v32, %v2174_v53  ;;  %v1428_v54 = vmul.f32 %v2838_v36, %v1396_v33  ;;  %v1083_v34 = vmul.f32 %v987_v19, %v987_v19 }
 0x1ca   : > { %1509 = vst [vmem:[%s2867_s23 + $0x8] sm:$0xff] %v1493_v12  ;;  %v2870_v62 = vmul.f32 %v1225_v14, %v1209_v40  ;;  %1919 = vrcp.f32 %v1051_v46  ;;  %v1115_v8 = vmul.f32 2.0, %v987_v19  ;;  %vm1286_vm13 = vcmp.gt.f32.partialorder %v2808_v56, 0.99800104 }
 0x1cb   : > { %v1444_v61 = vadd.f32 %v1428_v54, %v1412_v3  ;;  %v1195_v53 = vmul.f32 %v1179_v2, %v2561_v48  ;;  %v971_v23 = vadd.f32 1.0, %v955_v16  ;;  %v1914_v30 = vpop.eup %1913  ;;  %v2877_v11 = vsub.f32 1.0, %v2865_v37 }
 0x1cc   : > { %v1257_v15 = vmax.f32 %v2870_v62, 1e-10  ;;  %v1131_v58 = vmul.f32 %v1115_v8, %v2788_v31  ;;  %v1020_v28 = vmul.f32 %v2561_v48, %v2865_v37  ;;  %v1916_v1 = vpop.eup %1915  ;;  %v1303_v6 = vmul.f32 0.999, %v1914_v30  ;;  %v918_v30 = vpop.xlane.xlu1 %917 }
 0x1cd   : > { %vm1460_vm15 = vcmp.ge.f32.partialorder %v1444_v61, 0.0  ;;  %v1476_v22 = vmul.f32 0.2, %v1444_v61  ;;  %v1208_v2 = vadd.f32 %v2811_v47, %v1160_v18  ;;  %v2884_v41 = vmul.f32 %v1912_v24, %v2792_v59 }
 0x1ce   : > { %1921 = vrsqrt.f32 %v1257_v15  ;;  %v1224_v4 = vmul.f32 %v1916_v1, %v1916_v1  ;;  %v1099_v55 = vmul.f32 %v1083_v34, %v2770_v25  ;;  %v1319_v43 = vsel %vm1287_vm11, %v1303_v6, 1.0 }
 0x1cf   : > { %v1492_v16 = vsel %vm1460_vm15, %v1444_v61, %v1476_v22  ;;  %v1147_v32 = vmul.f32 %v1131_v58, %v2806_v17  ;;  %v2891_v33 = vadd.f32 %v2561_v48, %v971_v23  ;;  %v1367_v47 = vmul.f32 %v2799_v26, %v1319_v43 }
 0x1d0   : > { %v1918_v40 = vpop.eup %1917  ;;  %1508 = vst [vmem:[%s2867_s23] sm:$0xff] %v1492_v16  ;;  %v1399_v14 = vmul.f32 %v2802_v60, %v1319_v43  ;;  %v2896_v59 = vmul.f32 %v1224_v4, %v1208_v2  ;;  %v1036_v18 = vadd.f32 %v1020_v28, %v971_v23  ;;  %v1180_v25 = vmul.f32 %v2877_v11, %v2877_v11 }
 0x1d1   : > { %v1302_v46 = vmul.f32 0.999, %v1918_v40  ;;  %v1116_v45 = vmul.f32 2.0, %v2891_v33  ;;  %v822_v17 = vmul.f32 %v2646_v9, %v2468_v21  ;;  %v1415_v12 = vmul.f32 %v2182_v57, %v1367_v47 }
 0x1d2   : > { %v1431_v3 = vmul.f32 %v2838_v36, %v1399_v14  ;;  %v1385_v26 = vmul.f32 %v1912_v24, %v2730_v5  ;;  %v1256_v60 = vmax.f32 %v2896_v59, 1e-10  ;;  %v1163_v34 = vadd.f32 %v1147_v32, %v1099_v55 }
 0x1d3   : > { %v1318_v54 = vsel %vm1286_vm13, %v1302_v46, 1.0  ;;  %v2911_v8 = vmul.f32 %v987_v19, %v2781_v0  ;;  %v1052_v61 = vadd.f32 1e-05, %v1036_v18  ;;  %vm1289_vm1 = vcmp.gt.f32.partialorder %v2870_v62, 0.99800104 }
 0x1d4   : > { %v1447_v23 = vadd.f32 %v1431_v3, %v1415_v12  ;;  %v1366_v21 = vmul.f32 %v2823_v7, %v1318_v54  ;;  %v1398_v57 = vmul.f32 %v2848_v50, %v1318_v54  ;;  %1923 = vrsqrt.f32 %v1256_v60  ;;  %v3430_v7 = vld [vmem:[#allocation8_spill] sm:$0xff] }
 0x1d5   : > { %v2917_v5 = vmul.f32 %v1180_v25, %v2561_v48  ;;  %1925 = vrcp.f32 %v1052_v61  ;;  %v1132_v56 = vmul.f32 %v1116_v45, %v2877_v11  ;;  %v2922_v0 = vsel %vm806_vm14, 0.0, %v822_v17  ;;  %v3432_v61 = vld [vmem:[#allocation22_spill] sm:$0xff] }
 0x1d6   : > { %vm1463_vm2 = vcmp.ge.f32.partialorder %v1447_v23, 0.0  ;;  %v1479_v24 = vmul.f32 0.2, %v1447_v23  ;;  %v1414_v19 = vmul.f32 %v1366_v21, %v3430_v7  ;;  %v1430_v50 = vmul.f32 %v2838_v36, %v1398_v57  ;;  %v920_v57 = vpop.xlane.xlu0 %919  ;;  %v3433_v7 = vld [vmem:[#allocation11_spill] sm:$0xff] }
 0x1d7   : > { %v1920_v15 = vpop.eup %1919  ;;  %v1084_v58 = vmul.f32 %v2891_v33, %v2891_v33  ;;  %v854_v28 = vmul.f32 %v2646_v9, %v2646_v9  ;;  %v940_v22 = vmul.f32 %v918_v30, %v2922_v0  ;;  %v823_v6 = vmul.f32 %v2670_v42, %v2512_v27 }
 0x1d8   : > { %v1495_v2 = vsel %vm1463_vm2, %v1447_v23, %v1479_v24  ;;  %v1446_v4 = vadd.f32 %v1430_v50, %v1414_v19  ;;  %v1211_v55 = vadd.f32 %v1195_v53, %v1163_v34  ;;  %v1227_v16 = vmul.f32 %v1920_v15, %v1920_v15  ;;  %v3431_v34 = vld [vmem:[#allocation19_spill] sm:$0xff] }
 0x1d9   : > { %1511 = vst [vmem:[%s2867_s23 + $0x18] sm:$0xff] %v1495_v2  ;;  %v1352_v43 = vmul.f32 %v1916_v1, %v2826_v49  ;;  %v1384_v32 = vmul.f32 %v1916_v1, %v2766_v51  ;;  %v870_v40 = vsel %vm806_vm14, 0.0, %v854_v28  ;;  %v956_v47 = vmul.f32 2.0, %v940_v22 }
 0x1da   : > { %vm1462_vm3 = vcmp.ge.f32.partialorder %v1446_v4, 0.0  ;;  %v1478_v9 = vmul.f32 0.2, %v1446_v4  ;;  %v2938_v14 = vmul.f32 %v1227_v16, %v1211_v55  ;;  %v1148_v27 = vmul.f32 %v1132_v56, %v2842_v20 }
 0x1db   : > { %v1922_v18 = vpop.eup %1921  ;;  %vm1288_vm4 = vcmp.gt.f32.partialorder %v2896_v59, 0.99800104  ;;  %v2942_v53 = vsub.f32 1.0, %v870_v40  ;;  %v1021_v49 = vmul.f32 %v2561_v48, %v870_v40  ;;  %v972_v46 = vadd.f32 1.0, %v956_v47  ;;  %v922_v59 = vpop.xlane.xlu1 %921 }
 0x1dc   : > { %v2947_v44 = vsel %vm807_vm0, 0.0, %v823_v6  ;;  %v1494_v51 = vsel %vm1462_vm3, %v1446_v4, %v1478_v9  ;;  %v1305_v1 = vmul.f32 0.999, %v1922_v18  ;;  %v1259_v25 = vmax.f32 %v2938_v14, 1e-10 }
 0x1dd   : > { %v1100_v45 = vmul.f32 %v1084_v58, %v2865_v37  ;;  %1510 = vst [vmem:[%s2867_s23 + $0x10] sm:$0xff] %v1494_v51  ;;  %v2954_v20 = vmul.f32 %v2891_v33, %v2832_v63  ;;  %v989_v17 = vadd.f32 %v2561_v48, %v972_v46  ;;  %v1037_v12 = vadd.f32 %v1021_v49, %v972_v46 }
 0x1de   : > { %v855_v3 = vmul.f32 %v2670_v42, %v2670_v42  ;;  %v1321_v60 = vsel %vm1289_vm1, %v1305_v1, 1.0  ;;  %1927 = vrsqrt.f32 %v1259_v25  ;;  %vm808_vm5 = vcmp.eq.f32.partialorder %v3431_v34, 0.0 }
 0x1df   : > { %v1164_v54 = vadd.f32 %v1148_v27, %v1100_v45  ;;  %v824_v37 = vmul.f32 %v2658_v38, %v3432_v61  ;;  %v1369_v23 = vmul.f32 %v2884_v41, %v1321_v60  ;;  %v1401_v63 = vmul.f32 %v1385_v26, %v1321_v60 }
 0x1e0   : > { %v1181_v33 = vmul.f32 %v2942_v53, %v2942_v53  ;;  %v1053_v21 = vadd.f32 1e-05, %v1037_v12  ;;  %v1085_v30 = vmul.f32 %v989_v17, %v989_v17  ;;  %v1117_v42 = vmul.f32 2.0, %v989_v17 }
 0x1e1   : > { %v871_v62 = vsel %vm807_vm0, 0.0, %v855_v3  ;;  %v2970_v56 = vmul.f32 %v920_v57, %v2947_v44  ;;  %v1924_v24 = vpop.eup %1923  ;;  %v1417_v19 = vmul.f32 %v3433_v7, %v1369_v23  ;;  %v1433_v50 = vmul.f32 %v2838_v36, %v1401_v63 }
 0x1e2   : > { %v1355_v41 = vmul.f32 %v1920_v15, %v2911_v8  ;;  %1929 = vrcp.f32 %v1053_v21  ;;  %v2975_v26 = vpop.eup %1925  ;;  %v1304_v58 = vmul.f32 0.999, %v1924_v24  ;;  %v1387_v28 = vmul.f32 %v1920_v15, %v2788_v31 }
 0x1e3   : > { %v1101_v6 = vmul.f32 %v1085_v30, %v870_v40  ;;  %v1133_v52 = vmul.f32 %v1117_v42, %v2942_v53  ;;  %v1449_v2 = vadd.f32 %v1433_v50, %v1417_v19  ;;  %v1212_v4 = vadd.f32 %v2917_v5, %v1164_v54 }
 0x1e4   : > { %v1228_v55 = vmul.f32 %v2975_v26, %v2975_v26  ;;  %v1197_v16 = vmul.f32 %v1181_v33, %v2561_v48  ;;  %v1320_v8 = vsel %vm1288_vm4, %v1304_v58, 1.0  ;;  %v2985_v9 = vsub.f32 1.0, %v871_v62 }
 0x1e5   : > { %v1149_v47 = vmul.f32 %v1133_v52, %v940_v22  ;;  %v957_v31 = vmul.f32 2.0, %v2970_v56  ;;  %vm1465_vm6 = vcmp.ge.f32.partialorder %v1449_v2, 0.0  ;;  %v1481_v15 = vmul.f32 0.2, %v1449_v2  ;;  %v3434_v22 = vld [vmem:[#allocation12_spill] sm:$0xff] }
 0x1e6   : > { %v1368_v40 = vmul.f32 %v1352_v43, %v1320_v8  ;;  %v1400_v27 = vmul.f32 %v1384_v32, %v1320_v8  ;;  %vm1291_vm7 = vcmp.gt.f32.partialorder %v2938_v14, 0.99800104  ;;  %v2989_v5 = vmul.f32 %v1228_v55, %v1212_v4 }
 0x1e7   : > { %v1165_v18 = vadd.f32 %v1149_v47, %v1101_v6  ;;  %v1022_v49 = vmul.f32 %v2561_v48, %v871_v62  ;;  %v973_v46 = vadd.f32 1.0, %v957_v31  ;;  %v1497_v51 = vsel %vm1465_vm6, %v1449_v2, %v1481_v15  ;;  %v3435_v31 = vld [vmem:[#allocation20_spill] sm:$0xff] }
 0x1e8   : > { %v1416_v1 = vmul.f32 %v1368_v40, %v3434_v22  ;;  %v1432_v25 = vmul.f32 %v2838_v36, %v1400_v27  ;;  %v2996_v45 = vsel %vm808_vm5, 0.0, %v824_v37  ;;  %1513 = vst [vmem:[%s2867_s23 + $0x28] sm:$0xff] %v1497_v51  ;;  %v1260_v43 = vmax.f32 %v2989_v5, 1e-10 }
 0x1e9   : > { %v1213_v32 = vadd.f32 %v1197_v16, %v1165_v18  ;;  %v1182_v12 = vmul.f32 %v2985_v9, %v2985_v9  ;;  %v3003_v3 = vadd.f32 %v2561_v48, %v973_v46  ;;  %vm809_vm8 = vcmp.eq.f32.partialorder %v2479_v29, 0.0 }
 0x1ea   : > { %v1448_v60 = vadd.f32 %v1432_v25, %v1416_v1  ;;  %v1038_v54 = vadd.f32 %v1022_v49, %v973_v46  ;;  %v856_v61 = vmul.f32 %v2658_v38, %v2658_v38  ;;  %v3009_v37 = vmul.f32 %v922_v59, %v2996_v45  ;;  %v924_v49 = vpop.xlane.xlu0 %923 }
 0x1eb   : > { %1931 = vrsqrt.f32 %v1260_v43  ;;  %v1341_v23 = vmul.f32 %v989_v17, %v2922_v0  ;;  %v1086_v63 = vmul.f32 %v3003_v3, %v3003_v3  ;;  %v1118_v33 = vmul.f32 2.0, %v3003_v3  ;;  %v1928_v21 = vpop.eup %1927 }
 0x1ec   : > { %vm1464_vm9 = vcmp.ge.f32.partialorder %v1448_v60, 0.0  ;;  %v1480_v57 = vmul.f32 0.2, %v1448_v60  ;;  %v1054_v30 = vadd.f32 1e-05, %v1038_v54  ;;  %v872_v42 = vsel %vm808_vm5, 0.0, %v856_v61 }
 0x1ed   : > { %v1307_v38 = vmul.f32 0.999, %v1928_v21  ;;  %v3019_v24 = vmul.f32 %v2975_v26, %v2954_v20  ;;  %v1102_v7 = vmul.f32 %v1086_v63, %v871_v62  ;;  %v1134_v0 = vmul.f32 %v1118_v33, %v2985_v9  ;;  %v3437_v63 = vld [vmem:[#allocation25_spill] sm:$0xff] }
 0x1ee   : > { %v1496_v17 = vsel %vm1464_vm9, %v1448_v60, %v1480_v57  ;;  %v1198_v19 = vmul.f32 %v1182_v12, %v2561_v48  ;;  %1933 = vrcp.f32 %v1054_v30  ;;  %v958_v50 = vmul.f32 2.0, %v3009_v37 }
 0x1ef   : > { %v1930_v58 = vpop.eup %1929  ;;  %1512 = vst [vmem:[%s2867_s23 + $0x20] sm:$0xff] %v1496_v17  ;;  %v1323_v34 = vsel %vm1291_vm7, %v1307_v38, 1.0  ;;  %v1150_v6 = vmul.f32 %v1134_v0, %v2970_v56  ;;  %v3028_v52 = vsub.f32 1.0, %v872_v42  ;;  %v825_v20 = vmul.f32 %v2690_v35, %v2542_v13  ;;  %v3436_v56 = vld [vmem:[#allocation15_spill] sm:$0xff] }
 0x1f0   : > { %v1371_v62 = vmul.f32 %v1355_v41, %v1323_v34  ;;  %v1403_v2 = vmul.f32 %v1387_v28, %v1323_v34  ;;  %v1229_v4 = vmul.f32 %v1930_v58, %v1930_v58  ;;  %v3032_v55 = vmul.f32 %v1930_v58, %v1341_v23 }
 0x1f1   : > { %v3035_v16 = vmul.f32 %v1930_v58, %v2942_v53  ;;  %v1166_v8 = vadd.f32 %v1150_v6, %v1102_v7  ;;  %v1023_v47 = vmul.f32 %v2561_v48, %v872_v42  ;;  %v974_v14 = vadd.f32 1.0, %v958_v50  ;;  %v3439_v7 = vld [vmem:[#allocation26_spill] sm:$0xff] }
 0x1f2   : > { %vm810_vm10 = vcmp.eq.f32.partialorder %v3435_v31, 0.0  ;;  %v1419_v15 = vmul.f32 %v3436_v56, %v1371_v62  ;;  %v1435_v40 = vmul.f32 %v2838_v36, %v1403_v2  ;;  %v3041_v27 = vmul.f32 %v1229_v4, %v1213_v32 }
 0x1f3   : > { %v3045_v13 = vsel %vm809_vm8, 0.0, %v825_v20  ;;  %v1214_v41 = vadd.f32 %v1198_v19, %v1166_v8  ;;  %v3048_v53 = vadd.f32 %v2561_v48, %v974_v14  ;;  %v1039_v28 = vadd.f32 %v1023_v47, %v974_v14  ;;  %v3440_v8 = vld [vmem:[#allocation29_spill] sm:$0xff]  ;;  %v3441_v47 = vld [vmem:[#allocation7_spill] sm:$0xff] }
 0x1f4   : > { %v857_v18 = vmul.f32 %v2690_v35, %v2690_v35  ;;  %v1451_v46 = vadd.f32 %v1435_v40, %v1419_v15  ;;  %v1388_v59 = vmul.f32 %v2975_v26, %v2877_v11  ;;  %v1261_v51 = vmax.f32 %v3041_v27, 1e-10 }
 0x1f5   : > { %v3056_v22 = vmul.f32 %v924_v49, %v3045_v13  ;;  %v1183_v1 = vmul.f32 %v3028_v52, %v3028_v52  ;;  %v1055_v25 = vadd.f32 1e-05, %v1039_v28  ;;  %v1087_v43 = vmul.f32 %v3048_v53, %v3048_v53 }
 0x1f6   : > { %v1119_v35 = vmul.f32 2.0, %v3048_v53  ;;  %vm1467_vm11 = vcmp.ge.f32.partialorder %v1451_v46, 0.0  ;;  %v1483_v32 = vmul.f32 0.2, %v1451_v46  ;;  %1935 = vrsqrt.f32 %v1261_v51  ;;  %v926_v51 = vpop.xlane.xlu1 %925 }
 0x1f7   : > { %v873_v11 = vsel %vm809_vm8, 0.0, %v857_v18  ;;  %vm1292_vm12 = vcmp.gt.f32.partialorder %v2989_v5, 0.99800104  ;;  %1937 = vrcp.f32 %v1055_v25  ;;  %v1103_v26 = vmul.f32 %v1087_v43, %v872_v42 }
 0x1f8   : > { %v1135_v12 = vmul.f32 %v1119_v35, %v3028_v52  ;;  %v1932_v60 = vpop.eup %1931  ;;  %v1499_v54 = vsel %vm1467_vm11, %v1451_v46, %v1483_v32  ;;  %v1342_v61 = vmul.f32 %v3003_v3, %v2947_v44  ;;  %v959_v23 = vmul.f32 2.0, %v3056_v22  ;;  %v3438_v3 = vld [vmem:[#allocation21_spill] sm:$0xff] }
 0x1f9   : > { %v826_v33 = vmul.f32 %v2682_v10, %v3437_v63  ;;  %1515 = vst [vmem:[%s2867_s23 + $0x38] sm:$0xff] %v1499_v54  ;;  %v1308_v21 = vmul.f32 0.999, %v1932_v60  ;;  %v1199_v29 = vmul.f32 %v1183_v1, %v2561_v48  ;;  %v858_v30 = vmul.f32 %v2682_v10, %v2682_v10 }
 0x1fa   : > { %v1151_v57 = vmul.f32 %v1135_v12, %v3009_v37  ;;  %v3077_v42 = vsub.f32 1.0, %v873_v11  ;;  %v975_v38 = vadd.f32 1.0, %v959_v23  ;;  %vm803_vm13 = vcmp.eq.f32.partialorder %v3438_v3, 0.0 }
 0x1fb   : > { %v3081_v44 = vsel %vm810_vm10, 0.0, %v826_v33  ;;  %v819_v0 = vmul.f32 %v2723_v39, %v3439_v7  ;;  %v1934_v17 = vpop.eup %1933  ;;  %v1324_v19 = vsel %vm1292_vm12, %v1308_v21, 1.0  ;;  %v1024_v50 = vmul.f32 %v2561_v48, %v873_v11 }
 0x1fc   : > { %v1167_v37 = vadd.f32 %v1151_v57, %v1103_v26  ;;  %v3091_v10 = vsel %vm810_vm10, 0.0, %v858_v30  ;;  %v1372_v58 = vmul.f32 %v3019_v24, %v1324_v19  ;;  %v1404_v34 = vmul.f32 %v1388_v59, %v1324_v19  ;;  %v3443_v19 = vld [vmem:[#allocation6_spill] sm:$0xff] }
 0x1fd   : > { %v1230_v6 = vmul.f32 %v1934_v17, %v1934_v17  ;;  %v3094_v20 = vmul.f32 %v1934_v17, %v1342_v61  ;;  %v3097_v62 = vmul.f32 %v1934_v17, %v2985_v9  ;;  %v992_v5 = vadd.f32 %v2561_v48, %v975_v38  ;;  %v3442_v17 = vld [vmem:[#allocation23_spill] sm:$0xff] }
 0x1fe   : > { %v1215_v2 = vadd.f32 %v1199_v29, %v1167_v37  ;;  %v1040_v4 = vadd.f32 %v1024_v50, %v975_v38  ;;  %1939 = vtanh.f32 %v3440_v8  ;;  %v1420_v14 = vmul.f32 %v1372_v58, %v3441_v47 }
 0x1ff   : > { %v1436_v31 = vmul.f32 %v2838_v36, %v1404_v34  ;;  %v3103_v56 = vmul.f32 %v1230_v6, %v1214_v41  ;;  %v1088_v15 = vmul.f32 %v992_v5, %v992_v5  ;;  %v1120_v40 = vmul.f32 2.0, %v992_v5 }
 0x200   : > { %v1056_v24 = vadd.f32 1e-05, %v1040_v4  ;;  %v851_v28 = vmul.f32 %v2723_v39, %v2723_v39  ;;  %vm1293_vm14 = vcmp.gt.f32.partialorder %v3041_v27, 0.99800104  ;;  %v1184_v49 = vmul.f32 %v3077_v42, %v3077_v42 }
 0x201   : > { %v1452_v9 = vadd.f32 %v1436_v31, %v1420_v14  ;;  %v1262_v18 = vmax.f32 %v3103_v56, 1e-10  ;;  %v1104_v46 = vmul.f32 %v1088_v15, %v873_v11  ;;  %v1136_v59 = vmul.f32 %v1120_v40, %v3077_v42  ;;  %v3444_v14 = vld [vmem:[#allocation27_spill] sm:$0xff]  ;;  %v3445_v31 = vld [vmem:[#allocation30_spill] sm:$0xff] }
 0x202   : > { %1941 = vrcp.f32 %v1056_v24  ;;  %v3113_v41 = vsub.f32 1.0, %v3091_v10  ;;  %v944_v39 = vmul.f32 %v926_v51, %v3081_v44  ;;  %v1343_v43 = vmul.f32 %v3048_v53, %v2996_v45 }
 0x203   : > { %vm1468_vm15 = vcmp.ge.f32.partialorder %v1452_v9, 0.0  ;;  %v1484_v1 = vmul.f32 0.2, %v1452_v9  ;;  %1943 = vrsqrt.f32 %v1262_v18  ;;  %v1936_v25 = vpop.eup %1935  ;;  %v1152_v35 = vmul.f32 %v1136_v59, %v3056_v22  ;;  %v930_v18 = vpop.xlane.xlu1 %929 }
 0x204   : > { %v3121_v32 = vsel %vm803_vm13, 0.0, %v819_v0  ;;  %v3125_v11 = vsel %vm803_vm13, 0.0, %v851_v28  ;;  %v1938_v26 = vpop.eup %1937  ;;  %v1309_v60 = vmul.f32 0.999, %v1936_v25  ;;  %v1200_v54 = vmul.f32 %v1184_v49, %v2561_v48 }
 0x205   : > { %v1500_v12 = vsel %vm1468_vm15, %v1452_v9, %v1484_v1  ;;  %v960_v61 = vmul.f32 2.0, %v944_v39  ;;  %v1231_v23 = vmul.f32 %v1938_v26, %v1938_v26  ;;  %v3129_v63 = vmul.f32 %v1938_v26, %v1343_v43 }
 0x206   : > { %1516 = vst [vmem:[%s2867_s23 + $0x40] sm:$0xff] %v1500_v12  ;;  %v3132_v45 = vmul.f32 %v1938_v26, %v3028_v52  ;;  %v1168_v53 = vadd.f32 %v1152_v35, %v1104_v46  ;;  %v1325_v22 = vsel %vm1293_vm14, %v1309_v60, 1.0  ;;  %v1025_v33 = vmul.f32 %v2561_v48, %v3091_v10  ;;  %v912_v52 = vpop.xlane.xlu0 %911 }
 0x207   : > { %v1185_v21 = vmul.f32 %v3113_v41, %v3113_v41  ;;  %v976_v29 = vadd.f32 1.0, %v960_v61  ;;  %v1373_v57 = vmul.f32 %v3032_v55, %v1325_v22  ;;  %v1405_v30 = vmul.f32 %v3035_v16, %v1325_v22 }
 0x208   : > { %v3142_v38 = vmul.f32 %v1231_v23, %v1215_v2  ;;  %v1216_v3 = vadd.f32 %v1200_v54, %v1168_v53  ;;  %v3148_v0 = vmul.f32 %v912_v52, %v3121_v32  ;;  %vm812_vm0 = vcmp.eq.f32.partialorder %v3442_v17, 0.0 }
 0x209   : > { %v3145_v7 = vadd.f32 %v2561_v48, %v976_v29  ;;  %v1041_v27 = vadd.f32 %v1025_v33, %v976_v29  ;;  %v1421_v37 = vmul.f32 %v3443_v19, %v1373_v57  ;;  %v1437_v50 = vmul.f32 %v2838_v36, %v1405_v30 }
 0x20a   : > { %v1263_v55 = vmax.f32 %v3142_v38, 1e-10  ;;  %v1344_v16 = vmul.f32 %v992_v5, %v3045_v13  ;;  %v1201_v58 = vmul.f32 %v1185_v21, %v2561_v48  ;;  %v953_v47 = vmul.f32 2.0, %v3148_v0 }
 0x20b   : > { %v1057_v34 = vadd.f32 1e-05, %v1041_v27  ;;  %v1089_v6 = vmul.f32 %v3145_v7, %v3145_v7  ;;  %v1121_v2 = vmul.f32 2.0, %v3145_v7  ;;  %v1940_v4 = vpop.eup %1939  ;;  %v1453_v8 = vadd.f32 %v1437_v50, %v1421_v37  ;;  %v3446_v27 = vld [vmem:[#allocation28_spill] sm:$0xff]  ;;  %v3447_v37 = vld [vmem:[#allocation10_spill] sm:$0xff] }
 0x20c   : > { %1945 = vrsqrt.f32 %v1263_v55  ;;  %v828_v24 = vmul.f32 %v3445_v31, %v3444_v14  ;;  %v3165_v5 = vsub.f32 1.0, %v3125_v11  ;;  %v969_v28 = vadd.f32 1.0, %v953_v47 }
 0x20d   : > { %1947 = vrcp.f32 %v1057_v34  ;;  %v1105_v15 = vmul.f32 %v1089_v6, %v3091_v10  ;;  %v1137_v13 = vmul.f32 %v1121_v2, %v3113_v41  ;;  %vm1469_vm1 = vcmp.ge.f32.partialorder %v1453_v8, 0.0 }
 0x20e   : > { %v1485_v40 = vmul.f32 0.2, %v1453_v8  ;;  %v3169_v9 = vsel %vm812_vm0, 0.0, %v828_v24  ;;  %v1018_v59 = vmul.f32 %v2561_v48, %v3125_v11  ;;  %v860_v10 = vmul.f32 %v3445_v31, %v3445_v31 }
 0x20f   : > { %v1942_v49 = vpop.eup %1941  ;;  %v1153_v46 = vmul.f32 %v1137_v13, %v944_v39  ;;  %v3176_v51 = vmul.f32 %v930_v18, %v3169_v9  ;;  %v3185_v60 = vadd.f32 %v2561_v48, %v969_v28  ;;  %vm1294_vm2 = vcmp.gt.f32.partialorder %v3103_v56, 0.99800104 }
 0x210   : > { %v1944_v1 = vpop.eup %1943  ;;  %v1501_v25 = vsel %vm1469_vm1, %v1453_v8, %v1485_v40  ;;  %v1232_v43 = vmul.f32 %v1942_v49, %v1942_v49  ;;  %v3178_v35 = vmul.f32 %v1942_v49, %v1344_v16  ;;  %v3181_v26 = vmul.f32 %v1942_v49, %v3077_v42  ;;  %v3448_v16 = vld [vmem:[#allocation24_spill] sm:$0xff] }
 0x211   : > { %1517 = vst [vmem:[%s2867_s23 + $0x48] sm:$0xff] %v1501_v25  ;;  %v1310_v12 = vmul.f32 0.999, %v1944_v1  ;;  %v1169_v39 = vadd.f32 %v1153_v46, %v1105_v15  ;;  %v1034_v54 = vadd.f32 %v1018_v59, %v969_v28  ;;  %v1178_v23 = vmul.f32 %v3165_v5, %v3165_v5  ;;  %v928_v28 = vpop.xlane.xlu0 %927 }
 0x212   : > { %v3188_v61 = vmul.f32 %v1232_v43, %v1216_v3  ;;  %v962_v53 = vmul.f32 2.0, %v3176_v51  ;;  %v1082_v21 = vmul.f32 %v3185_v60, %v3185_v60  ;;  %v3200_v56 = vsel %vm812_vm0, 0.0, %v860_v10 }
 0x213   : > { %v1326_v22 = vsel %vm1294_vm2, %v1310_v12, 1.0  ;;  %v1217_v33 = vadd.f32 %v1201_v58, %v1169_v39  ;;  %v1050_v42 = vadd.f32 1e-05, %v1034_v54  ;;  %v1114_v52 = vmul.f32 2.0, %v3185_v60 }
 0x214   : > { %v1374_v29 = vmul.f32 %v3094_v20, %v1326_v22  ;;  %v1406_v57 = vmul.f32 %v3097_v62, %v1326_v22  ;;  %v1264_v30 = vmax.f32 %v3188_v61, 1e-10  ;;  %v1098_v3 = vmul.f32 %v1082_v21, %v3125_v11 }
 0x215   : > { %1949 = vrcp.f32 %v1050_v42  ;;  %v827_v19 = vmul.f32 %v1940_v4, %v3446_v27  ;;  %v1130_v20 = vmul.f32 %v1114_v52, %v3165_v5  ;;  %v1027_v62 = vmul.f32 %v2561_v48, %v3200_v56 }
 0x216   : > { %v1422_v50 = vmul.f32 %v1374_v29, %v3447_v37  ;;  %v1438_v55 = vmul.f32 %v2838_v36, %v1406_v57  ;;  %1951 = vrsqrt.f32 %v1264_v30  ;;  %v978_v17 = vadd.f32 1.0, %v962_v53 }
 0x217   : > { %vm811_vm3 = vcmp.eq.f32.partialorder %v3448_v16, 0.0  ;;  %vm1295_vm4 = vcmp.gt.f32.partialorder %v3142_v38, 0.99800104  ;;  %v1345_v11 = vmul.f32 %v3145_v7, %v3081_v44  ;;  %v1194_v34 = vmul.f32 %v1178_v23, %v2561_v48  ;;  %v3449_v38 = vld [vmem:[#allocation9_spill] sm:$0xff] }
 0x218   : > { %v1454_v58 = vadd.f32 %v1438_v55, %v1422_v50  ;;  %v1146_v2 = vmul.f32 %v1130_v20, %v3148_v0  ;;  %v1043_v8 = vadd.f32 %v1027_v62, %v978_v17  ;;  %v3218_v47 = vsel %vm811_vm3, 0.0, %v827_v19 }
 0x219   : > { %v1946_v6 = vpop.eup %1945  ;;  %v859_v14 = vmul.f32 %v1940_v4, %v1940_v4  ;;  %v3221_v13 = vadd.f32 %v2561_v48, %v978_v17  ;;  %v3231_v46 = vmul.f32 %v928_v28, %v3218_v47  ;;  %v1338_v22 = vmul.f32 %v3185_v60, %v3121_v32 }
 0x21a   : > { %v1948_v31 = vpop.eup %1947  ;;  %vm1470_vm5 = vcmp.ge.f32.partialorder %v1454_v58, 0.0  ;;  %v1486_v24 = vmul.f32 0.2, %v1454_v58  ;;  %v1311_v15 = vmul.f32 0.999, %v1946_v6  ;;  %v1162_v0 = vadd.f32 %v1146_v2, %v1098_v3  ;;  %v3450_v6 = vld [vmem:[#allocation14_spill] sm:$0xff] }
 0x21b   : > { %v1233_v44 = vmul.f32 %v1948_v31, %v1948_v31  ;;  %v3223_v7 = vmul.f32 %v1948_v31, %v1345_v11  ;;  %v3226_v40 = vmul.f32 %v1948_v31, %v3113_v41  ;;  %v1059_v4 = vadd.f32 1e-05, %v1043_v8 }
 0x21c   : > { %v1502_v18 = vsel %vm1470_vm5, %v1454_v58, %v1486_v24  ;;  %v1327_v49 = vsel %vm1295_vm4, %v1311_v15, 1.0  ;;  %v1210_v25 = vadd.f32 %v1194_v34, %v1162_v0  ;;  %v3239_v41 = vsub.f32 1.0, %v3200_v56 }
 0x21d   : > { %1518 = vst [vmem:[%s2867_s23 + $0x50] sm:$0xff] %v1502_v18  ;;  %v1375_v59 = vmul.f32 %v3129_v63, %v1327_v49  ;;  %v1407_v10 = vmul.f32 %v3132_v45, %v1327_v49  ;;  %v3236_v1 = vmul.f32 %v1233_v44, %v1217_v33  ;;  %1953 = vrcp.f32 %v1059_v4 }
 0x21e   : > { %v1123_v43 = vmul.f32 2.0, %v3221_v13  ;;  %v875_v63 = vsel %vm811_vm3, 0.0, %v859_v14  ;;  %v961_v23 = vmul.f32 2.0, %v3231_v46  ;;  %v1091_v42 = vmul.f32 %v3221_v13, %v3221_v13 }
 0x21f   : > { %v1423_v12 = vmul.f32 %v3449_v38, %v1375_v59  ;;  %v1439_v39 = vmul.f32 %v2838_v36, %v1407_v10  ;;  %v1265_v54 = vmax.f32 %v3236_v1, 1e-10  ;;  %v1026_v21 = vmul.f32 %v2561_v48, %v875_v63 }
 0x220   : > { %v1139_v45 = vmul.f32 %v1123_v43, %v3239_v41  ;;  %v977_v29 = vadd.f32 1.0, %v961_v23  ;;  %vm1296_vm7 = vcmp.gt.f32.partialorder %v3188_v61, 0.99800104  ;;  %v1187_v62 = vmul.f32 %v3239_v41, %v3239_v41 }
 0x221   : > { %v1455_v53 = vadd.f32 %v1439_v39, %v1423_v12  ;;  %1955 = vrsqrt.f32 %v1265_v54  ;;  %v1107_v17 = vmul.f32 %v1091_v42, %v3200_v56  ;;  %v3272_v14 = vsub.f32 1.0, %v875_v63  ;;  %v3451_v39 = vld [vmem:[#allocation13_spill] sm:$0xff] }
 0x222   : > { %v1950_v33 = vpop.eup %1949  ;;  %v1155_v37 = vmul.f32 %v1139_v45, %v3176_v51  ;;  %v3259_v32 = vadd.f32 %v2561_v48, %v977_v29  ;;  %v1042_v55 = vadd.f32 %v1026_v21, %v977_v29  ;;  %v1203_v8 = vmul.f32 %v1187_v62, %v2561_v48 }
 0x223   : > { %v1952_v57 = vpop.eup %1951  ;;  %vm1471_vm6 = vcmp.ge.f32.partialorder %v1455_v53, 0.0  ;;  %v1487_v30 = vmul.f32 0.2, %v1455_v53  ;;  %v1226_v3 = vmul.f32 %v1950_v33, %v1950_v33  ;;  %v3254_v52 = vmul.f32 %v1950_v33, %v1338_v22 }
 0x224   : > { %v1312_v27 = vmul.f32 0.999, %v1952_v57  ;;  %v1386_v19 = vmul.f32 %v1950_v33, %v3165_v5  ;;  %v1171_v58 = vadd.f32 %v1155_v37, %v1107_v17  ;;  %v1058_v11 = vadd.f32 1e-05, %v1042_v55 }
 0x225   : > { %v1503_v60 = vsel %vm1471_vm6, %v1455_v53, %v1487_v30  ;;  %v1242_v50 = vmul.f32 %v1226_v3, %v1210_v25  ;;  %v1122_v34 = vmul.f32 2.0, %v3259_v32  ;;  %v1090_v28 = vmul.f32 %v3259_v32, %v3259_v32  ;;  %v3452_v3 = vld [vmem:[#allocation16_spill] sm:$0xff] }
 0x226   : > { %1519 = vst [vmem:[%s2867_s23 + $0x58] sm:$0xff] %v1503_v60  ;;  %v1328_v20 = vsel %vm1296_vm7, %v1312_v27, 1.0  ;;  %v1219_v31 = vadd.f32 %v1203_v8, %v1171_v58  ;;  %vm1297_vm9 = vcmp.gt.f32.partialorder %v3236_v1, 0.99800104  ;;  %v1186_v25 = vmul.f32 %v3272_v14, %v3272_v14  ;;  %v3453_v58 = vld [vmem:[#allocation17_spill] sm:$0xff] }
 0x227   : > { %v1376_v16 = vmul.f32 %v3178_v35, %v1328_v20  ;;  %v1408_v5 = vmul.f32 %v3181_v26, %v1328_v20  ;;  %v1258_v51 = vmax.f32 %v1242_v50, 1e-10  ;;  %v1138_v24 = vmul.f32 %v1122_v34, %v3272_v14 }
 0x228   : > { %v1106_v12 = vmul.f32 %v1090_v28, %v875_v63  ;;  %vm1290_vm10 = vcmp.gt.f32.partialorder %v1242_v50, 0.99800104  ;;  %v1347_v55 = vmul.f32 %v3221_v13, %v3169_v9 }
 0x229   : > { %v1424_v61 = vmul.f32 %v1376_v16, %v3450_v6  ;;  %v1440_v2 = vmul.f32 %v2838_v36, %v1408_v5  ;;  %1957 = vrsqrt.f32 %v1258_v51  ;;  %v1154_v59 = vmul.f32 %v1138_v24, %v3231_v46 }
 0x22a   : > { %1959 = vrcp.f32 %v1058_v11  ;;  %v1954_v56 = vpop.eup %1953  ;;  %v1202_v46 = vmul.f32 %v1186_v25, %v2561_v48 }
 0x22b   : > { %v1456_v35 = vadd.f32 %v1440_v2, %v1424_v61  ;;  %v1235_v26 = vmul.f32 %v1954_v56, %v1954_v56  ;;  %v1170_v23 = vadd.f32 %v1154_v59, %v1106_v12  ;;  %v1346_v2 = vmul.f32 %v3259_v32, %v3218_v47 }
 0x22d   : > { %vm1472_vm8 = vcmp.ge.f32.partialorder %v1456_v35, 0.0  ;;  %v1488_v15 = vmul.f32 0.2, %v1456_v35  ;;  %v1251_v0 = vmul.f32 %v1235_v26, %v1219_v31  ;;  %v3454_v26 = vld [vmem:[#allocation18_spill] sm:$0xff] }
 0x22e   : > { %v1956_v44 = vpop.eup %1955 }
 0x22f   : > { %v1504_v18 = vsel %vm1472_vm8, %v1456_v35, %v1488_v15  ;;  %v1313_v49 = vmul.f32 0.999, %v1956_v44  ;;  %v1267_v4 = vmax.f32 %v1251_v0, 1e-10  ;;  %vm1299_vm13 = vcmp.gt.f32.partialorder %v1251_v0, 0.99800104 }
 0x230   : > { %1520 = vst [vmem:[%s2867_s23 + $0x60] sm:$0xff] %v1504_v18  ;;  %v1966_v15 = vld [vmem:[%s3359_s2] ss:$0 sm:$0xff] }
 0x231   : > { %v1329_v10 = vsel %vm1297_vm9, %v1313_v49, 1.0  ;;  %1961 = vrsqrt.f32 %v1267_v4 }
 0x232   : > { %v1377_v43 = vmul.f32 %v3223_v7, %v1329_v10  ;;  %v1409_v38 = vmul.f32 %v3226_v40, %v1329_v10  ;;  %v1218_v7 = vadd.f32 %v1202_v46, %v1170_v23 }
 0x234   : > { %v1425_v54 = vmul.f32 %v3451_v39, %v1377_v43  ;;  %v1441_v45 = vmul.f32 %v2838_v36, %v1409_v38 }
 0x236   : > { %v1958_v1 = vpop.eup %1957  ;;  %v1457_v53 = vadd.f32 %v1441_v45, %v1425_v54 }
 0x237   : > { %v1960_v22 = vpop.eup %1959  ;;  %v1306_v33 = vmul.f32 0.999, %v1958_v1 }
 0x238   : > { %vm1473_vm11 = vcmp.ge.f32.partialorder %v1457_v53, 0.0  ;;  %v1489_v42 = vmul.f32 0.2, %v1457_v53  ;;  %v1234_v21 = vmul.f32 %v1960_v22, %v1960_v22  ;;  %v1362_v8 = vmul.f32 %v1960_v22, %v1346_v2 }
 0x239   : > { %v1322_v40 = vsel %vm1290_vm10, %v1306_v33, 1.0 }
 0x23a   : > { %v1505_v29 = vsel %vm1473_vm11, %v1457_v53, %v1489_v42  ;;  %v1370_v63 = vmul.f32 %v3254_v52, %v1322_v40  ;;  %v1402_v57 = vmul.f32 %v1386_v19, %v1322_v40  ;;  %v1250_v30 = vmul.f32 %v1234_v21, %v1218_v7 }
 0x23b   : > { %1521 = vst [vmem:[%s2867_s23 + $0x68] sm:$0xff] %v1505_v29  ;;  %v1363_v52 = vmul.f32 %v1954_v56, %v1347_v55  ;;  %v1395_v19 = vmul.f32 %v1954_v56, %v3239_v41  ;;  %v1394_v56 = vmul.f32 %v1960_v22, %v3272_v14 }
 0x23c   : > { %v1418_v27 = vmul.f32 %v1370_v63, %v3452_v3  ;;  %v1434_v37 = vmul.f32 %v2838_v36, %v1402_v57  ;;  %v1266_v48 = vmax.f32 %v1250_v30, 1e-10  ;;  %vm1298_vm15 = vcmp.gt.f32.partialorder %v1250_v30, 0.99800104 }
 0x23e   : > { %v1450_v60 = vadd.f32 %v1434_v37, %v1418_v27  ;;  %1963 = vrsqrt.f32 %v1266_v48  ;;  %v1962_v50 = vpop.eup %1961 }
 0x23f   : > { %v1315_v62 = vmul.f32 0.999, %v1962_v50 }
 0x240   : > { %vm1466_vm12 = vcmp.ge.f32.partialorder %v1450_v60, 0.0  ;;  %v1482_v20 = vmul.f32 0.2, %v1450_v60 }
 0x241   : > { %v1331_v16 = vsel %vm1299_vm13, %v1315_v62, 1.0 }
 0x242   : > { %v1498_v17 = vsel %vm1466_vm12, %v1450_v60, %v1482_v20  ;;  %v1379_v5 = vmul.f32 %v1363_v52, %v1331_v16  ;;  %v1411_v51 = vmul.f32 %v1395_v19, %v1331_v16 }
 0x243   : > { %1514 = vst [vmem:[%s2867_s23 + $0x30] sm:$0xff] %v1498_v17 }
 0x244   : > { %v1427_v11 = vmul.f32 %v3453_v58, %v1379_v5  ;;  %v1443_v34 = vmul.f32 %v2838_v36, %v1411_v51 }
 0x246   : > { %v1459_v6 = vadd.f32 %v1443_v34, %v1427_v11 }
 0x248   : > { %vm1475_vm14 = vcmp.ge.f32.partialorder %v1459_v6, 0.0  ;;  %v1491_v9 = vmul.f32 0.2, %v1459_v6 }
 0x24a   : > { %v1507_v61 = vsel %vm1475_vm14, %v1459_v6, %v1491_v9 }
 0x24b   : > { %v1964_v13 = vpop.eup %1963  ;;  %1523 = vst [vmem:[%s2867_s23 + $0x78] sm:$0xff] %v1507_v61 }
 0x24c   : > { %v1314_v41 = vmul.f32 0.999, %v1964_v13 }
 0x24e   : > { %v1330_v35 = vsel %vm1298_vm15, %v1314_v41, 1.0 }
 0x24f   : > { %v1378_v36 = vmul.f32 %v1362_v8, %v1330_v35  ;;  %v1410_v31 = vmul.f32 %v1394_v56, %v1330_v35 }
 0x251   : > { %v1426_v24 = vmul.f32 %v1378_v36, %v3454_v26  ;;  %v1442_v44 = vmul.f32 %v1966_v15, %v1410_v31 }
 0x253   : > { %v1458_v47 = vadd.f32 %v1442_v44, %v1426_v24 }
 0x255   : > { %vm1474_vm0 = vcmp.ge.f32.partialorder %v1458_v47, 0.0  ;;  %v1490_v32 = vmul.f32 0.2, %v1458_v47 }
 0x257   : > { %v1506_v14 = vsel %vm1474_vm0, %v1458_v47, %v1490_v32 }
 0x258   : > { %1522 = vst [vmem:[%s2867_s23 + $0x70] sm:$0xff] %v1506_v14 }
 0x259   : > { %1980 = shalt.err (!%p1977_p3)
}
 0x25a   : > { %s1981_s12 = scalar_lea.hbm %s3310_s7, 2048  ;;  %s1985_s15 = scalar_lea.hbm %s3361_s4, 4096 }
 0x25b   : > { %p1982_p4 = scmp.ne.s32.totalorder %s3310_s7, %s1981_s12  ;;  %p1986_p9 = scmp.lt.s32.totalorder %s3310_s7, %s3361_s4 }
 0x25c   : > { %p1987_p10 = scmp.lt.s32.totalorder %s1985_s15, %s1981_s12 }
 0x25d   : > { %p1983_p7 = pnand %p1982_p4, %p2098_p5 }
 0x25e   : > { %p1988_p11 = por %p1987_p10, %p1986_p9 }
 0x25f   : > { %p1984_p8 = pneg %p1983_p7 }
 0x261   : > { %p1989_p12 = pnand %p1988_p11, %p1984_p8 }
 0x263   : > { %1992 = shalt.err (!%p1989_p12)
}
 0x264   : > { %s2030_s23 = smov 128   ;;  %s2031_s24 = smov 8  }
 0x265   : > { %1698 = dma.vmem_to_hbm [thread:$0]  (%p2098_p5), %s3312_s30, 2048, %s3310_s7, %s3317_s8, %s2030_s23, %s2030_s23, %s2031_s24  }
 0x266 PF: > { %p1704_p13 = scmp.ge.s32.totalorder %s2027_s20, 2  ;;  %s1553_s28 = sand.u32 1, %s2015_s17  }
 0x267   : > { %s1554_s29 = scalar_lea.sflag [#allocation4], %s1553_s28 }
 0x268   : > { %p1701_p0 = pnand %p1704_p13, %p2102_p6 }
 0x26a   : > { %p1702_p1 = pneg %p1701_p0 }
 0x26c   : > { %2010 = dma.done.wait (%p1702_p1), %s1554_s29, 2048  }
 0x26d   : > { %2012 = vsyncadd (%p1702_p1), %s1554_s29, 4294965248  ;;  %p15_p2 = scmp.ge.s32.totalorder %s2085_s22, 4   ;;  %s3455_s17 = smov %s2019_s18 }
 0x26e   : > { %s3456_s18 = smov %s2023_s19  ;;  %s3457_s19 = smov %s2096_s25 }
 0x26f   : > { %s3458_s20 = smov %s2085_s22  ;;  %17 = sbr.rel (!%p15_p2) target bundleno = 5 (0x5), region = 71 }
 0x274   :  { %1559 = vsyncpa [#allocation4], 1 }
 0x275   :  { %1561 = vsyncpa [#allocation4 + $0x1], 1 }

</bundles_post_ra>
